<compile_context>
chip_gen: v5e
topology: v5e:2x2
jax: 0.10.0
libtpu: 0.0.40
codegen_flags: <defaults>
</compile_context>

<pallas_src>
import functools

import jax
import jax.numpy as jnp
from jax.experimental import pallas as pl
from jax.experimental.pallas import tpu as pltpu

K = 5                   # ConvTranspose1d kernel == stride; conv kernels = 5, pad = 2
LANE_CAP = 32 * 1024    # max lanes (batches * Lseg) handled per grid step


def _round_up(x, m):
    return (x + m - 1) // m * m


# ------------------------------------------------------------ fused kernel --
def decoder_block_kernel(pos_ref, x1e_ref, x2_ref, wup_ref, w1u_ref, w1x_ref,
                         w2_ref, o_ref, *, cp, lseg, l_real):
    """One grid step = NB batch elements concatenated along the lane axis.

    pos_ref : (CP, NLb) int32  within-segment position (lane mod Lseg)
    x1e_ref : (K*Cin, NLb)     zero-expanded x1 (upsample == one matmul)
    x2_ref  : (C2, NLb)
    wup_ref : (CP, K*Cin)      ConvTranspose weights, flattened taps
    w1u_ref : (K*CP, CP)       conv1 weights, taps stacked on the out dim,
    w1x_ref : (K*CP, C2)       split into rows hitting `up` vs `x2` (no concat)
    w2_ref  : (K*CP, CP)
    o_ref   : (CP, NLb)
    """
    f32 = jnp.float32
    nlb = o_ref.shape[-1]
    pos = pos_ref[...]

    # ---- tap-shift validity masks: computed ONCE, reused by conv1 & conv2 --
    # shift d reads column pos+d of the same segment; mask segment edges so
    # lane rolls never leak across batch boundaries (or wrap around the block).
    masks = {}
    for d in (-2, -1, 1, 2):
        masks[d] = (pos >= -d) if d < 0 else (pos < lseg - d)

    def tap_shift(t, d):
        # y[:, q] = t[:, q + d] within the segment, 0 outside.
        if d == 0:
            return t
        y = pltpu.roll(t, (-d) % nlb, axis=1)          # XLU slot, lane-aligned
        return jnp.where(masks[d], y, 0.0)

    def conv5(t_stacked):
        # t_stacked: (K*CP, NLb); tap k lives in rows [k*CP, (k+1)*CP)
        # (sublane-tile-aligned slices since CP is a multiple of 8).
        acc = jnp.zeros((cp, nlb), f32)
        for k in range(K):
            acc = acc + tap_shift(t_stacked[k * cp:(k + 1) * cp, :], k - K // 2)
        return acc

    # ---- upsample: ConvTranspose1d(kernel=stride=K, pad=0) == ONE matmul ----
    up = jnp.dot(wup_ref[...], x1e_ref[...], preferred_element_type=f32)

    # ---- conv1 (k=5, pad=2) on cat([up, x2]); concat never materialized -----
    t1 = (jnp.dot(w1u_ref[...], up, preferred_element_type=f32)
          + jnp.dot(w1x_ref[...], x2_ref[...], preferred_element_type=f32))
    h = jnp.maximum(conv5(t1), 0.0)                                   # ReLU
    if lseg > l_real:
        # zero the per-segment length padding so conv2 sees true zero-padding
        h = jnp.where(pos < l_real, h, 0.0)

    # ---- conv2 (k=5, pad=2) + ReLU ------------------------------------------
    t2 = jnp.dot(w2_ref[...], h, preferred_element_type=f32)
    o_ref[...] = jnp.maximum(conv5(t2), 0.0)                          # ReLU


# ----------------------------------------------------------------- wrapper --
def decoder_block(x1, x2, w_up, w_conv1, w_conv2):
    """x1: (N, Cin, L1), x2: (N, C2, L) in PyTorch NCL layout, L == K*L1.
    w_up:    (Cin, Cout, K)        -- ConvTranspose1d weight (in, out, k)
    w_conv1: (Cout, Cin_total, K)  -- Conv1d weight (out, in, k)
    w_conv2: (Cout, Cout, K)
    returns: (N, Cout, L) in NCL layout (bias=False everywhere, as in spec)."""
    n, cin, l1 = x1.shape
    _, c2, l = x2.shape
    cout = w_up.shape[1]
    cin_total = w_conv1.shape[1]
    assert l == l1 * K and cout + c2 == cin_total

    f32 = jnp.float32
    cp = _round_up(cout, 8)        # pad out-channels to full sublane tiles
    lseg = _round_up(l, 128)       # pad each batch segment to full lane tiles

    # how many batch elements share one grid step (concatenated along lanes)
    nb = 1
    for cand in range(n, 0, -1):
        if n % cand == 0 and cand * lseg <= LANE_CAP:
            nb = cand
            break
    grid = (n // nb,)
    nlb = nb * lseg

    # ---- activations: NCL -> channels x (batch * length) lanes --------------
    x2t = jnp.transpose(x2.astype(f32), (1, 0, 2))                    # (C2,N,L)
    x2f = jnp.pad(x2t, ((0, 0), (0, 0), (0, lseg - l))).reshape(c2, n * lseg)

    # zero-expanded x1: x1e[k*Cin+ci, n*Lseg + p] = x1[n,ci,p//K] if p%K==k else 0
    # so  up = Wup_flat @ x1e  performs matmul + tap interleave exactly.
    eye = jnp.eye(K, dtype=f32)
    x1e = (x1.astype(f32)[:, None, :, :, None] *
           eye[None, :, None, None, :])                               # (N,K,Cin,L1,K)
    x1e = jnp.transpose(x1e, (1, 2, 0, 3, 4)).reshape(K * cin, n, l)
    x1e = jnp.pad(x1e, ((0, 0), (0, 0), (0, lseg - l))).reshape(K * cin, n * lseg)

    # within-segment position (drives the edge masks of both convs)
    pos = jnp.broadcast_to(
        jnp.tile(jnp.arange(lseg, dtype=jnp.int32), n)[None, :], (cp, n * lseg))

    # ---- weights: taps stacked on the out dim, out-channels padded to CP ----
    wupf = jnp.transpose(w_up, (1, 2, 0)).reshape(cout, K * cin).astype(f32)
    wupf = jnp.pad(wupf, ((0, cp - cout), (0, 0)))                    # (CP, K*Cin)

    w1 = jnp.transpose(w_conv1, (2, 0, 1)).astype(f32)                # (K,Cout,Cin_tot)
    w1u = jnp.pad(w1[:, :, :cout],
                  ((0, 0), (0, cp - cout), (0, cp - cout))).reshape(K * cp, cp)
    w1x = jnp.pad(w1[:, :, cout:],
                  ((0, 0), (0, cp - cout), (0, 0))).reshape(K * cp, c2)

    w2 = jnp.transpose(w_conv2, (2, 0, 1)).astype(f32)                # (K,Cout,Cout)
    w2s = jnp.pad(w2, ((0, 0), (0, cp - cout), (0, cp - cout))).reshape(K * cp, cp)

    flops = 2 * n * K * (cout * cin * l1 + cout * cin_total * l + cout * cout * l)
    bytes_accessed = 4 * (x1e.size + x2f.size + pos.size + wupf.size + w1u.size
                          + w1x.size + w2s.size + cp * n * lseg)

    kernel = functools.partial(decoder_block_kernel, cp=cp, lseg=lseg, l_real=l)

    out = pl.pallas_call(
        kernel,
        out_shape=jax.ShapeDtypeStruct((cp, n * lseg), f32),
        grid=grid,
        in_specs=[
            pl.BlockSpec((cp, nlb), lambda g: (0, g)),
            pl.BlockSpec((K * cin, nlb), lambda g: (0, g)),
            pl.BlockSpec((c2, nlb), lambda g: (0, g)),
            pl.BlockSpec((cp, K * cin), lambda g: (0, 0)),
            pl.BlockSpec((K * cp, cp), lambda g: (0, 0)),
            pl.BlockSpec((K * cp, c2), lambda g: (0, 0)),
            pl.BlockSpec((K * cp, cp), lambda g: (0, 0)),
        ],
        out_specs=pl.BlockSpec((cp, nlb), lambda g: (0, g)),
        compiler_params=pltpu.CompilerParams(
            dimension_semantics=("parallel",)),
        cost_estimate=pl.CostEstimate(flops=flops, transcendentals=0,
                                      bytes_accessed=bytes_accessed),
    )(pos, x1e, x2f, wupf, w1u, w1x, w2s)

    out = out.reshape(cp, n, lseg)[:cout, :, :l]       # drop channel/length pad
    return jnp.transpose(out, (1, 0, 2))               # back to NCL


# -------------------------------------------------------------------- main --
def _reference(x1, x2, w_up, w_c1, w_c2):
    n, _, l1 = x1.shape
    cout = w_up.shape[1]
    up = jnp.einsum("ncl,cok->nolk", x1, w_up,
                    precision=jax.lax.Precision.HIGHEST).reshape(n, cout, l1 * K)
    cat = jnp.concatenate([up, x2], axis=1)

    def conv1d_same(x, w):
        return jax.lax.conv_general_dilated(
            x, w, window_strides=(1,), padding=((2, 2),),
            dimension_numbers=("NCH", "OIH", "NCH"),
            precision=jax.lax.Precision.HIGHEST)

    return jax.nn.relu(conv1d_same(jax.nn.relu(conv1d_same(cat, w_c1)), w_c2))


def _run_case(key, n, inplanes, outplanes, l1):
    k1, k2, k3, k4, k5 = jax.random.split(key, 5)
    l = l1 * K
    c2 = inplanes - outplanes
    x1 = jax.random.normal(k1, (n, inplanes, l1), jnp.float32)
    x2 = jax.random.normal(k2, (n, c2, l), jnp.float32)
    w_up = 0.1 * jax.random.normal(k3, (inplanes, outplanes, K), jnp.float32)
    w_c1 = 0.1 * jax.random.normal(k4, (outplanes, inplanes, K), jnp.float32)
    w_c2 = 0.1 * jax.random.normal(k5, (outplanes, outplanes, K), jnp.float32)

    out = jax.block_until_ready(decoder_block(x1, x2, w_up, w_c1, w_c2))
    ref = _reference(x1, x2, w_up, w_c1, w_c2)

    assert out.shape == (n, outplanes, l)
    err = jnp.max(jnp.abs(out - ref))
    assert jnp.allclose(out, ref, atol=1e-3, rtol=1e-3), f"max abs err = {err}"


if __name__ == "__main__":
    key = jax.random.PRNGKey(0)
    ka, kb = jax.random.split(key)
    # main config: L = 640 (lane-aligned)
    _run_case(ka, n=2, inplanes=8, outplanes=4, l1=128)
    # non-128-aligned L = 125 -> exercises the per-segment length padding path
    _run_case(kb, n=2, inplanes=8, outplanes=4, l1=25)
    print("KERNEL_OK")
</pallas_src>

<mosaic_0001>
module attributes {stable_mosaic.version = 11 : i64} {
  func.func @decoder_block_kernel(%arg0: i32, %arg1: memref<8x1280xi32, #tpu.memory_space<vmem>>, %arg2: memref<40x1280xf32, #tpu.memory_space<vmem>>, %arg3: memref<4x1280xf32, #tpu.memory_space<vmem>>, %arg4: memref<8x40xf32, #tpu.memory_space<vmem>>, %arg5: memref<40x8xf32, #tpu.memory_space<vmem>>, %arg6: memref<40x4xf32, #tpu.memory_space<vmem>>, %arg7: memref<40x8xf32, #tpu.memory_space<vmem>>, %arg8: memref<8x1280xf32, #tpu.memory_space<vmem>>) attributes {dimension_semantics = [#tpu.dimension_semantics<parallel>], iteration_bounds = array<i64: 1>, scalar_prefetch = 0 : i64, scratch_operands = 0 : i64, tpu.core_type = #tpu.core_type<tc>, window_params = [{transform_indices = @transform_0, window_bounds = array<i64: 8, 1280>}, {transform_indices = @transform_1, window_bounds = array<i64: 40, 1280>}, {transform_indices = @transform_2, window_bounds = array<i64: 4, 1280>}, {pipeline_mode = #tpu.pipeline_mode<synchronous>, transform_indices = @transform_3, window_bounds = array<i64: 8, 40>}, {pipeline_mode = #tpu.pipeline_mode<synchronous>, transform_indices = @transform_4, window_bounds = array<i64: 40, 8>}, {pipeline_mode = #tpu.pipeline_mode<synchronous>, transform_indices = @transform_5, window_bounds = array<i64: 40, 4>}, {pipeline_mode = #tpu.pipeline_mode<synchronous>, transform_indices = @transform_6, window_bounds = array<i64: 40, 8>}, {transform_indices = @transform_7, window_bounds = array<i64: 8, 1280>}]} {
    %c0 = arith.constant 0 : index
    %c0_0 = arith.constant 0 : index
    %0 = vector.load %arg1[%c0, %c0_0] : memref<8x1280xi32, #tpu.memory_space<vmem>>, vector<8x1280xi32>
    %c2_i32 = arith.constant 2 : i32
    %1 = vector.broadcast %c2_i32 : i32 to vector<8x1280xi32>
    %2 = arith.cmpi sge, %0, %1 : vector<8x1280xi32>
    %c1_i32 = arith.constant 1 : i32
    %3 = vector.broadcast %c1_i32 : i32 to vector<8x1280xi32>
    %4 = arith.cmpi sge, %0, %3 : vector<8x1280xi32>
    %c639_i32 = arith.constant 639 : i32
    %5 = vector.broadcast %c639_i32 : i32 to vector<8x1280xi32>
    %6 = arith.cmpi slt, %0, %5 : vector<8x1280xi32>
    %c638_i32 = arith.constant 638 : i32
    %7 = vector.broadcast %c638_i32 : i32 to vector<8x1280xi32>
    %8 = arith.cmpi slt, %0, %7 : vector<8x1280xi32>
    %c0_1 = arith.constant 0 : index
    %c0_2 = arith.constant 0 : index
    %9 = vector.load %arg4[%c0_1, %c0_2] : memref<8x40xf32, #tpu.memory_space<vmem>>, vector<8x40xf32>
    %c0_3 = arith.constant 0 : index
    %c0_4 = arith.constant 0 : index
    %10 = vector.load %arg2[%c0_3, %c0_4] : memref<40x1280xf32, #tpu.memory_space<vmem>>, vector<40x1280xf32>
    %cst = arith.constant dense<0.000000e+00> : vector<8x1280xf32>
    %11 = tpu.matmul %9, %10, %cst {dimension_numbers = #tpu.dot_dimension_numbers<[1], [0], [0], [1], [0, 0, 1, 1], [], []>} : vector<8x40xf32>, vector<40x1280xf32>, vector<8x1280xf32> -> vector<8x1280xf32>
    %c0_5 = arith.constant 0 : index
    %c0_6 = arith.constant 0 : index
    %12 = vector.load %arg5[%c0_5, %c0_6] : memref<40x8xf32, #tpu.memory_space<vmem>>, vector<40x8xf32>
    %cst_7 = arith.constant dense<0.000000e+00> : vector<40x1280xf32>
    %13 = tpu.matmul %12, %11, %cst_7 {dimension_numbers = #tpu.dot_dimension_numbers<[1], [0], [0], [1], [0, 0, 1, 1], [], []>} : vector<40x8xf32>, vector<8x1280xf32>, vector<40x1280xf32> -> vector<40x1280xf32>
    %c0_8 = arith.constant 0 : index
    %c0_9 = arith.constant 0 : index
    %14 = vector.load %arg6[%c0_8, %c0_9] : memref<40x4xf32, #tpu.memory_space<vmem>>, vector<40x4xf32>
    %c0_10 = arith.constant 0 : index
    %c0_11 = arith.constant 0 : index
    %15 = vector.load %arg3[%c0_10, %c0_11] : memref<4x1280xf32, #tpu.memory_space<vmem>>, vector<4x1280xf32>
    %cst_12 = arith.constant dense<0.000000e+00> : vector<40x1280xf32>
    %16 = tpu.matmul %14, %15, %cst_12 {dimension_numbers = #tpu.dot_dimension_numbers<[1], [0], [0], [1], [0, 0, 1, 1], [], []>} : vector<40x4xf32>, vector<4x1280xf32>, vector<40x1280xf32> -> vector<40x1280xf32>
    %17 = arith.addf %13, %16 : vector<40x1280xf32>
    %cst_13 = arith.constant 0.000000e+00 : f32
    %18 = vector.broadcast %cst_13 : f32 to vector<8x1280xf32>
    %19 = vector.extract_strided_slice %17 {offsets = [0, 0], sizes = [8, 1280], strides = [1, 1]} : vector<40x1280xf32> to vector<8x1280xf32>
    %c2_i32_14 = arith.constant 2 : i32
    %20 = tpu.dynamic_rotate %19 by %c2_i32_14 dim 1 : vector<8x1280xf32>, i32 -> vector<8x1280xf32>
    %cst_15 = arith.constant 0.000000e+00 : f32
    %21 = vector.broadcast %cst_15 : f32 to vector<8x1280xf32>
    %22 = arith.select %2, %20, %21 : vector<8x1280xi1>, vector<8x1280xf32>
    %23 = arith.addf %18, %22 : vector<8x1280xf32>
    %24 = vector.extract_strided_slice %17 {offsets = [8, 0], sizes = [8, 1280], strides = [1, 1]} : vector<40x1280xf32> to vector<8x1280xf32>
    %c1_i32_16 = arith.constant 1 : i32
    %25 = tpu.dynamic_rotate %24 by %c1_i32_16 dim 1 : vector<8x1280xf32>, i32 -> vector<8x1280xf32>
    %cst_17 = arith.constant 0.000000e+00 : f32
    %26 = vector.broadcast %cst_17 : f32 to vector<8x1280xf32>
    %27 = arith.select %4, %25, %26 : vector<8x1280xi1>, vector<8x1280xf32>
    %28 = arith.addf %23, %27 : vector<8x1280xf32>
    %29 = vector.extract_strided_slice %17 {offsets = [16, 0], sizes = [8, 1280], strides = [1, 1]} : vector<40x1280xf32> to vector<8x1280xf32>
    %30 = arith.addf %28, %29 : vector<8x1280xf32>
    %31 = vector.extract_strided_slice %17 {offsets = [24, 0], sizes = [8, 1280], strides = [1, 1]} : vector<40x1280xf32> to vector<8x1280xf32>
    %c1279_i32 = arith.constant 1279 : i32
    %32 = tpu.dynamic_rotate %31 by %c1279_i32 dim 1 : vector<8x1280xf32>, i32 -> vector<8x1280xf32>
    %cst_18 = arith.constant 0.000000e+00 : f32
    %33 = vector.broadcast %cst_18 : f32 to vector<8x1280xf32>
    %34 = arith.select %6, %32, %33 : vector<8x1280xi1>, vector<8x1280xf32>
    %35 = arith.addf %30, %34 : vector<8x1280xf32>
    %36 = vector.extract_strided_slice %17 {offsets = [32, 0], sizes = [8, 1280], strides = [1, 1]} : vector<40x1280xf32> to vector<8x1280xf32>
    %c1278_i32 = arith.constant 1278 : i32
    %37 = tpu.dynamic_rotate %36 by %c1278_i32 dim 1 : vector<8x1280xf32>, i32 -> vector<8x1280xf32>
    %cst_19 = arith.constant 0.000000e+00 : f32
    %38 = vector.broadcast %cst_19 : f32 to vector<8x1280xf32>
    %39 = arith.select %8, %37, %38 : vector<8x1280xi1>, vector<8x1280xf32>
    %40 = arith.addf %35, %39 : vector<8x1280xf32>
    %cst_20 = arith.constant 0.000000e+00 : f32
    %41 = vector.broadcast %cst_20 : f32 to vector<8x1280xf32>
    %42 = arith.maximumf %40, %41 : vector<8x1280xf32>
    %c0_21 = arith.constant 0 : index
    %c0_22 = arith.constant 0 : index
    %43 = vector.load %arg7[%c0_21, %c0_22] : memref<40x8xf32, #tpu.memory_space<vmem>>, vector<40x8xf32>
    %cst_23 = arith.constant dense<0.000000e+00> : vector<40x1280xf32>
    %44 = tpu.matmul %43, %42, %cst_23 {dimension_numbers = #tpu.dot_dimension_numbers<[1], [0], [0], [1], [0, 0, 1, 1], [], []>} : vector<40x8xf32>, vector<8x1280xf32>, vector<40x1280xf32> -> vector<40x1280xf32>
    %cst_24 = arith.constant 0.000000e+00 : f32
    %45 = vector.broadcast %cst_24 : f32 to vector<8x1280xf32>
    %46 = vector.extract_strided_slice %44 {offsets = [0, 0], sizes = [8, 1280], strides = [1, 1]} : vector<40x1280xf32> to vector<8x1280xf32>
    %c2_i32_25 = arith.constant 2 : i32
    %47 = tpu.dynamic_rotate %46 by %c2_i32_25 dim 1 : vector<8x1280xf32>, i32 -> vector<8x1280xf32>
    %cst_26 = arith.constant 0.000000e+00 : f32
    %48 = vector.broadcast %cst_26 : f32 to vector<8x1280xf32>
    %49 = arith.select %2, %47, %48 : vector<8x1280xi1>, vector<8x1280xf32>
    %50 = arith.addf %45, %49 : vector<8x1280xf32>
    %51 = vector.extract_strided_slice %44 {offsets = [8, 0], sizes = [8, 1280], strides = [1, 1]} : vector<40x1280xf32> to vector<8x1280xf32>
    %c1_i32_27 = arith.constant 1 : i32
    %52 = tpu.dynamic_rotate %51 by %c1_i32_27 dim 1 : vector<8x1280xf32>, i32 -> vector<8x1280xf32>
    %cst_28 = arith.constant 0.000000e+00 : f32
    %53 = vector.broadcast %cst_28 : f32 to vector<8x1280xf32>
    %54 = arith.select %4, %52, %53 : vector<8x1280xi1>, vector<8x1280xf32>
    %55 = arith.addf %50, %54 : vector<8x1280xf32>
    %56 = vector.extract_strided_slice %44 {offsets = [16, 0], sizes = [8, 1280], strides = [1, 1]} : vector<40x1280xf32> to vector<8x1280xf32>
    %57 = arith.addf %55, %56 : vector<8x1280xf32>
    %58 = vector.extract_strided_slice %44 {offsets = [24, 0], sizes = [8, 1280], strides = [1, 1]} : vector<40x1280xf32> to vector<8x1280xf32>
    %c1279_i32_29 = arith.constant 1279 : i32
    %59 = tpu.dynamic_rotate %58 by %c1279_i32_29 dim 1 : vector<8x1280xf32>, i32 -> vector<8x1280xf32>
    %cst_30 = arith.constant 0.000000e+00 : f32
    %60 = vector.broadcast %cst_30 : f32 to vector<8x1280xf32>
    %61 = arith.select %6, %59, %60 : vector<8x1280xi1>, vector<8x1280xf32>
    %62 = arith.addf %57, %61 : vector<8x1280xf32>
    %63 = vector.extract_strided_slice %44 {offsets = [32, 0], sizes = [8, 1280], strides = [1, 1]} : vector<40x1280xf32> to vector<8x1280xf32>
    %c1278_i32_31 = arith.constant 1278 : i32
    %64 = tpu.dynamic_rotate %63 by %c1278_i32_31 dim 1 : vector<8x1280xf32>, i32 -> vector<8x1280xf32>
    %cst_32 = arith.constant 0.000000e+00 : f32
    %65 = vector.broadcast %cst_32 : f32 to vector<8x1280xf32>
    %66 = arith.select %8, %64, %65 : vector<8x1280xi1>, vector<8x1280xf32>
    %67 = arith.addf %62, %66 : vector<8x1280xf32>
    %cst_33 = arith.constant 0.000000e+00 : f32
    %68 = vector.broadcast %cst_33 : f32 to vector<8x1280xf32>
    %69 = arith.maximumf %67, %68 : vector<8x1280xf32>
    %c0_34 = arith.constant 0 : index
    %c0_35 = arith.constant 0 : index
    %70 = vector.load %arg8[%c0_34, %c0_35] : memref<8x1280xf32, #tpu.memory_space<vmem>>, vector<8x1280xf32>
    tpu.vector_store %arg8[%c0_34, %c0_35], %69 {strides = array<i32>} : memref<8x1280xf32, #tpu.memory_space<vmem>>, vector<8x1280xf32>,
    return
  }
  func.func @transform_0(%arg0: i32) -> (i32, i32) {
    %c0_i32 = arith.constant 0 : i32
    %c0_i32_0 = arith.constant 0 : i32
    return %c0_i32, %arg0 : i32, i32
  }
  func.func @transform_1(%arg0: i32) -> (i32, i32) {
    %c0_i32 = arith.constant 0 : i32
    %c0_i32_0 = arith.constant 0 : i32
    return %c0_i32, %arg0 : i32, i32
  }
  func.func @transform_2(%arg0: i32) -> (i32, i32) {
    %c0_i32 = arith.constant 0 : i32
    %c0_i32_0 = arith.constant 0 : i32
    return %c0_i32, %arg0 : i32, i32
  }
  func.func @transform_3(%arg0: i32) -> (i32, i32) {
    %c0_i32 = arith.constant 0 : i32
    %c0_i32_0 = arith.constant 0 : i32
    %c0_i32_1 = arith.constant 0 : i32
    return %c0_i32, %c0_i32_0 : i32, i32
  }
  func.func @transform_4(%arg0: i32) -> (i32, i32) {
    %c0_i32 = arith.constant 0 : i32
    %c0_i32_0 = arith.constant 0 : i32
    %c0_i32_1 = arith.constant 0 : i32
    return %c0_i32, %c0_i32_0 : i32, i32
  }
  func.func @transform_5(%arg0: i32) -> (i32, i32) {
    %c0_i32 = arith.constant 0 : i32
    %c0_i32_0 = arith.constant 0 : i32
    %c0_i32_1 = arith.constant 0 : i32
    return %c0_i32, %c0_i32_0 : i32, i32
  }
  func.func @transform_6(%arg0: i32) -> (i32, i32) {
    %c0_i32 = arith.constant 0 : i32
    %c0_i32_0 = arith.constant 0 : i32
    %c0_i32_1 = arith.constant 0 : i32
    return %c0_i32, %c0_i32_0 : i32, i32
  }
  func.func @transform_7(%arg0: i32) -> (i32, i32) {
    %c0_i32 = arith.constant 0 : i32
    %c0_i32_0 = arith.constant 0 : i32
    return %c0_i32, %arg0 : i32, i32
  }
}

</mosaic_0001>

<bundles_post_ra>
// kernel: tpu_custom_call.1
= control target key start
LH: loop header
LB: loop body
LE: loop exit
PB: predicated region body
PF: predicated region fallthrough
CT: control target
= control target key end

     0   :  { %12 = vsyncpa [#allocation3], 0  ;;  %s3451_s0 = inlined_call_operand.vmem [shape: s32[8,1280], index: 0, kind: input, shape index: {}]   ;;  %s3452_s1 = inlined_call_operand.hbm [shape: f32[40,1280], index: 1, kind: input, shape index: {}]   ;;  %s3453_s2 = inlined_call_operand.vmem [shape: f32[4,1280], index: 2, kind: input, shape index: {}]   ;;  %s3454_s3 = inlined_call_operand.vmem [shape: f32[8,40], index: 3, kind: input, shape index: {}]   ;;  %s3455_s4 = inlined_call_operand.vmem [shape: f32[40,8], index: 4, kind: input, shape index: {}]   ;;  %s3456_s5 = inlined_call_operand.vmem [shape: f32[40,4], index: 5, kind: input, shape index: {}]   ;;  %s3457_s6 = inlined_call_operand.vmem [shape: f32[40,8], index: 6, kind: input, shape index: {}]   ;;  %s3458_s7 = inlined_call_operand.hbm [shape: f32[8,1280], index: 7, kind: output, shape index: {}]  }
   0x1   :  { %13 = vsyncpa [#allocation4], 0  ;;  %s20_s26 = sshll.u32 %s3452_s1, 4  ;;  %s2122_s27 = smov [#allocation2]   ;;  %s21_s26 = int_to_ptr.hbm [resolvable:$true] %s20_s26 }
   0x2   :  { %s22_s28 = sshll.u32 %s2122_s27, 4  ;;  %s2123_s29 = smov 1280   ;;  %s23_s28 = int_to_ptr.vmem [resolvable:$true] %s22_s28 }
   0x3   :  { %s2124_s30 = smov 80  }
   0x4   :  { %28 = dma.hbm_to_vmem [thread:$0]  %s21_s26, 6400, %s23_s28, [#allocation3], %s2123_s29, %s2123_s29, %s2124_s30  }
   0x5   :  { %2118 = dma.done.wait [#allocation3], 6400  }
   0x6   :  { %2119 = vsyncadd [#allocation3], 4294960896  ;;  %v134_v0 = vld [vmem:[#allocation2 + $0x140] sm:$0xff]  ;;  %v135_v1 = vld [vmem:[#allocation2 + $0x148] sm:$0xff]  ;;  %vm144_vm0 = vcmask 326656   ;;  %vm402_vm1 = vcmask 1043456  }
   0x7   :  { %v124_v2 = vld [vmem:[#allocation2 + $0xf0] sm:$0xff]  ;;  %159 = vmatpush.msra.mxu0 %v134_v0  ;;  %179 = vmatpush.msra.mxu1 %v135_v1  ;;  %v125_v3 = vld [vmem:[#allocation2 + $0xf8] sm:$0xff]  ;;  %v114_v4 = vld [vmem:[#allocation2 + $0xa0] sm:$0xff]  ;;  %vm386_vm2 = vcmask 31744   ;;  %vm743_vm3 = vcmask 64512   ;;  %s2126_s11 = smov 1  }
   0x8   :  { %v115_v5 = vld [vmem:[#allocation2 + $0xa8] sm:$0xff]  ;;  %v140_v6 = vld [vmem:[#allocation2 + $0x170] sm:$0xff]  ;;  %v141_v7 = vld [vmem:[#allocation2 + $0x178] sm:$0xff]  ;;  %s2127_s12 = smov 127   ;;  %s2128_s13 = smov 126  }
   0x9   :  { %160 = vmatpush.msra.mxu0 %v124_v2  ;;  %180 = vmatpush.msra.mxu1 %v125_v3  ;;  %v104_v8 = vld [vmem:[#allocation2 + $0x50] sm:$0xff]  ;;  %v105_v9 = vld [vmem:[#allocation2 + $0x58] sm:$0xff]  ;;  %v94_v10 = vld [vmem:[#allocation2] sm:$0xff] }
   0xa   :  { %279 = vmatpush.msra.mxu2 %v140_v6  ;;  %299 = vmatpush.msra.mxu3 %v141_v7  ;;  %v130_v11 = vld [vmem:[#allocation2 + $0x120] sm:$0xff]  ;;  %v131_v12 = vld [vmem:[#allocation2 + $0x128] sm:$0xff]  ;;  %v120_v14 = vld [vmem:[#allocation2 + $0xd0] sm:$0xff] }
   0xb   :  { %161 = vmatpush.msra.mxu0 %v114_v4  ;;  %181 = vmatpush.msra.mxu1 %v115_v5  ;;  %v95_v13 = vld [vmem:[#allocation2 + $0x8] sm:$0xff]  ;;  %v121_v15 = vld [vmem:[#allocation2 + $0xd8] sm:$0xff]  ;;  %v136_v17 = vld [vmem:[#allocation2 + $0x150] sm:$0xff] }
   0xc   :  { %280 = vmatpush.msra.mxu2 %v130_v11  ;;  %300 = vmatpush.msra.mxu3 %v131_v12  ;;  %v2176_v16 = vld [vmem:[%s3454_s3] sm:$0xff]  ;;  %v110_v19 = vld [vmem:[#allocation2 + $0x80] sm:$0xff]  ;;  %v111_v20 = vld [vmem:[#allocation2 + $0x88] sm:$0xff] }
   0xd   :  { %162 = vmatpush.msra.mxu0 %v104_v8  ;;  %182 = vmatpush.msra.mxu1 %v105_v9  ;;  %v137_v18 = vld [vmem:[#allocation2 + $0x158] sm:$0xff]  ;;  %v126_v21 = vld [vmem:[#allocation2 + $0x100] sm:$0xff]  ;;  %v127_v22 = vld [vmem:[#allocation2 + $0x108] sm:$0xff] }
   0xe   :  { %281 = vmatpush.msra.mxu2 %v120_v14  ;;  %301 = vmatpush.msra.mxu3 %v121_v15  ;;  %v358_v23 = vld [vmem:[%s3453_s2] sm:$0xff]  ;;  %v100_v24 = vld [vmem:[#allocation2 + $0x30] sm:$0xff]  ;;  %v106_v28 = vld [vmem:[#allocation2 + $0x60] sm:$0xff] }
   0xf   :  { %163 = vmatpush.msra.mxu0 %v94_v10  ;;  %183 = vmatpush.msra.mxu1 %v95_v13  ;;  %v101_v25 = vld [vmem:[#allocation2 + $0x38] sm:$0xff]  ;;  %368 = vst [vmem:[#allocation1] ss:$2 sm:$0xff] %v358_v23  ;;  %v116_v26 = vld [vmem:[#allocation2 + $0xb0] sm:$0xff]  ;;  %v107_v29 = vld [vmem:[#allocation2 + $0x68] sm:$0xff] }
  0x10   :  { %1892 = vmatmul.msk.f32.vlgmr.msra.gmra.mxu0 %vm144_vm0, %v2176_v16  ;;  %1893 = vmatmul.msk.f32.vlgmr.msra.gmra.mxu1 %vm144_vm0, %v2176_v16  ;;  %v117_v27 = vld [vmem:[#allocation2 + $0xb8] sm:$0xff]  ;;  %v96_v30 = vld [vmem:[#allocation2 + $0x10] sm:$0xff]  ;;  %v138_v35 = vld [vmem:[#allocation2 + $0x160] sm:$0xff] }
  0x11   :  { %199 = vmatpush.msrb.mxu0 %v136_v17  ;;  %219 = vmatpush.msrb.mxu1 %v137_v18  ;;  %v97_v31 = vld [vmem:[#allocation2 + $0x18] sm:$0xff]  ;;  %v139_v36 = vld [vmem:[#allocation2 + $0x168] sm:$0xff]  ;;  %v359_v37 = vld [vmem:[%s3453_s2 + $0x8] sm:$0xff] }
  0x12   :  { %282 = vmatpush.msra.mxu2 %v110_v19  ;;  %302 = vmatpush.msra.mxu3 %v111_v20  ;;  %v362_v32 = vld [vmem:[%s3453_s2 + $0x20] sm:$0xff]  ;;  %370 = vst [vmem:[#allocation1 + $0x10] ss:$2 sm:$0xff] %v359_v37  ;;  %v128_v39 = vld [vmem:[#allocation2 + $0x110] sm:$0xff]  ;;  %v118_v41 = vld [vmem:[#allocation2 + $0xc0] sm:$0xff] }
  0x13   :  { %200 = vmatpush.msrb.mxu0 %v126_v21  ;;  %220 = vmatpush.msrb.mxu1 %v127_v22  ;;  %v2204_v38 = vld [vmem:[%s3456_s5] sm:$0xff]  ;;  %v119_v42 = vld [vmem:[#allocation2 + $0xc8] sm:$0xff]  ;;  %v108_v44 = vld [vmem:[#allocation2 + $0x70] sm:$0xff] }
  0x14   :  { %283 = vmatpush.msra.mxu2 %v100_v24  ;;  %303 = vmatpush.msra.mxu3 %v101_v25  ;;  %v129_v40 = vld [vmem:[#allocation2 + $0x118] sm:$0xff]  ;;  %v360_v43 = vld [vmem:[%s3453_s2 + $0x10] sm:$0xff]  ;;  %v98_v46 = vld [vmem:[#allocation2 + $0x20] sm:$0xff] }
  0x15   :  { %201 = vmatpush.msrb.mxu0 %v116_v26  ;;  %221 = vmatpush.msrb.mxu1 %v117_v27  ;;  %v109_v45 = vld [vmem:[#allocation2 + $0x78] sm:$0xff]  ;;  %372 = vst [vmem:[#allocation1 + $0x20] ss:$2 sm:$0xff] %v360_v43  ;;  %v99_v47 = vld [vmem:[#allocation2 + $0x28] sm:$0xff]  ;;  %v2216_v48 = vld [vmem:[%s3456_s5 + $0x8] sm:$0xff] }
  0x16   :  { %1898 = vmatmul.msk.f32.vlgmr.msra.gmra.mxu2 %vm144_vm0, %v2176_v16  ;;  %1899 = vmatmul.msk.f32.vlgmr.msra.gmra.mxu3 %vm144_vm0, %v2176_v16  ;;  %v375_v33 = vld.sshfl [vmem:[#allocation1] sm:$0xff pattern:$0x75316420]  ;;  %v376_v34 = vld.sshfl [vmem:[#allocation1 + $0x8] sm:$0xff pattern:$0x75316420] }
  0x17   :  { %202 = vmatpush.msrb.mxu0 %v106_v28  ;;  %222 = vmatpush.msrb.mxu1 %v107_v29  ;;  %383 = vst [vmem:[#allocation1] ss:$2 sm:$0xff] %v362_v32  ;;  %v142_v49 = vld [vmem:[#allocation2 + $0x180] sm:$0xff]  ;;  %v143_v50 = vld [vmem:[#allocation2 + $0x188] sm:$0xff]  ;;  %v132_v51 = vld [vmem:[#allocation2 + $0x130] sm:$0xff] }
  0x18   :  { %1902 = vmatpush.msk.msrb.mxu2 %vm402_vm1, %v375_v33  ;;  %1908 = vmatpush.msk.msrb.mxu3 %vm402_vm1, %v376_v34  ;;  %v133_v52 = vld [vmem:[#allocation2 + $0x138] sm:$0xff]  ;;  %v122_v55 = vld [vmem:[#allocation2 + $0xe0] sm:$0xff]  ;;  %v123_v56 = vld [vmem:[#allocation2 + $0xe8] sm:$0xff] }
  0x19   :  { %203 = vmatpush.msrb.mxu0 %v96_v30  ;;  %223 = vmatpush.msrb.mxu1 %v97_v31  ;;  %v112_v57 = vld [vmem:[#allocation2 + $0x90] sm:$0xff]  ;;  %v113_v58 = vld [vmem:[#allocation2 + $0x98] sm:$0xff]  ;;  %v2231_v59 = vld [vmem:[%s3456_s5 + $0x10] sm:$0xff] }
  0x1a   :  { %1894 = vmatmul.msk.f32.vlgmr.msrb.gmra.mxu0 %vm144_vm0, %v2176_v16  ;;  %1895 = vmatmul.msk.f32.vlgmr.msrb.gmra.mxu1 %vm144_vm0, %v2176_v16  ;;  %v102_v60 = vld [vmem:[#allocation2 + $0x40] sm:$0xff]  ;;  %v103_v61 = vld [vmem:[#allocation2 + $0x48] sm:$0xff]  ;;  %v378_v63 = vld.sshfl [vmem:[#allocation1 + $0x18] sm:$0xff pattern:$0x75316420] }
  0x1b   :  { %239 = vmatpush.msra.mxu0 %v138_v35  ;;  %259 = vmatpush.msra.mxu1 %v139_v36  ;;  %v377_v62 = vld.sshfl [vmem:[#allocation1 + $0x10] sm:$0xff pattern:$0x75316420]  ;;  %v356_v0 = vld [vmem:[%s3456_s5 + $0x18] sm:$0xff]  ;;  %v357_v1 = vld [vmem:[%s3456_s5 + $0x20] sm:$0xff] }
  0x1c   :  { %v379_v53 = vld.sshfl [vmem:[#allocation1 + $0x20] sm:$0xff pattern:$0x75316420]  ;;  %v380_v54 = vld.sshfl [vmem:[#allocation1 + $0x28] sm:$0xff pattern:$0x75316420] }
  0x1d   :  { %240 = vmatpush.msra.mxu0 %v128_v39  ;;  %260 = vmatpush.msra.mxu1 %v129_v40  ;;  %v361_v2 = vld [vmem:[%s3453_s2 + $0x18] sm:$0xff]  ;;  %v2325_v7 = vld [vmem:[%s3455_s4] sm:$0xff]  ;;  %v2336_v10 = vld [vmem:[%s3455_s4 + $0x8] sm:$0xff] }
  0x1e   :  { %1903 = vmatmul.msk.f32.vlgmr.msrb.gmra.mxu2 %vm386_vm2, %v2204_v38  ;;  %1909 = vmatmul.msk.f32.vlgmr.msrb.gmra.mxu3 %vm386_vm2, %v2204_v38  ;;  %374 = vst [vmem:[#allocation1 + $0x30] ss:$2 sm:$0xff] %v361_v2  ;;  %v384_v5 = vld.sshfl [vmem:[#allocation1] sm:$0xff pattern:$0x75316420]  ;;  %v2349_v15 = vld [vmem:[%s3455_s4 + $0x10] sm:$0xff] }
  0x1f   :  { %241 = vmatpush.msra.mxu0 %v118_v41  ;;  %261 = vmatpush.msra.mxu1 %v119_v42  ;;  %v385_v6 = vld.sshfl [vmem:[#allocation1 + $0x8] sm:$0xff pattern:$0x75316420]  ;;  %v2366_v18 = vld [vmem:[%s3455_s4 + $0x18] sm:$0xff]  ;;  %v2383_v23 = vld [vmem:[%s3455_s4 + $0x20] sm:$0xff]  ;;  %s2125_s4 = smov 2  }
  0x20   :  { %1926 = vmatpush.msk.msra.mxu2 %vm402_vm1, %v379_v53  ;;  %1932 = vmatpush.msk.msra.mxu3 %vm402_vm1, %v380_v54 }
  0x21   :  { %242 = vmatpush.msra.mxu0 %v108_v44  ;;  %262 = vmatpush.msra.mxu1 %v109_v45 }
  0x22   :  { %1950 = vmatpush.msk.msrb.mxu2 %vm402_vm1, %v384_v5  ;;  %1956 = vmatpush.msk.msrb.mxu3 %vm402_vm1, %v385_v6 }
  0x23   :  { %243 = vmatpush.msra.mxu0 %v98_v46  ;;  %263 = vmatpush.msra.mxu1 %v99_v47 }
  0x24   :  { %1896 = vmatmul.msk.f32.vlgmr.msra.gmra.mxu0 %vm144_vm0, %v2176_v16  ;;  %1897 = vmatmul.msk.f32.vlgmr.msra.gmra.mxu1 %vm144_vm0, %v2176_v16 }
  0x25   :  { %319 = vmatpush.msrb.mxu0 %v142_v49  ;;  %339 = vmatpush.msrb.mxu1 %v143_v50  ;;  %v381_v3 = vld.sshfl [vmem:[#allocation1 + $0x30] sm:$0xff pattern:$0x75316420]  ;;  %v382_v4 = vld.sshfl [vmem:[#allocation1 + $0x38] sm:$0xff pattern:$0x75316420] }
  0x26   :  { %1904 = vmatmul.msk.f32.gmra.mxu2 %vm386_vm2, %v2216_v48  ;;  %1910 = vmatmul.msk.f32.gmra.mxu3 %vm386_vm2, %v2216_v48 }
  0x27   :  { %320 = vmatpush.msrb.mxu0 %v132_v51  ;;  %340 = vmatpush.msrb.mxu1 %v133_v52 }
  0x29   :  { %321 = vmatpush.msrb.mxu0 %v122_v55  ;;  %341 = vmatpush.msrb.mxu1 %v123_v56 }
  0x2b   :  { %322 = vmatpush.msrb.mxu0 %v112_v57  ;;  %342 = vmatpush.msrb.mxu1 %v113_v58 }
  0x2d   :  { %323 = vmatpush.msrb.mxu0 %v102_v60  ;;  %343 = vmatpush.msrb.mxu1 %v103_v61 }
  0x2e   :  { %1905 = vmatmul.msk.f32.gmra.mxu2 %vm386_vm2, %v2231_v59  ;;  %1911 = vmatmul.msk.f32.gmra.mxu3 %vm386_vm2, %v2231_v59 }
  0x2f   :  { %1900 = vmatmul.msk.f32.vlgmr.msrb.gmra.mxu0 %vm144_vm0, %v2176_v16  ;;  %1901 = vmatmul.msk.f32.vlgmr.msrb.gmra.mxu1 %vm144_vm0, %v2176_v16 }
  0x30   :  { %1914 = vmatpush.msk.msra.mxu0 %vm402_vm1, %v377_v62  ;;  %1920 = vmatpush.msk.msra.mxu1 %vm402_vm1, %v378_v63 }
  0x32   :  { %1938 = vmatpush.msk.msrb.mxu0 %vm402_vm1, %v381_v3  ;;  %1944 = vmatpush.msk.msrb.mxu1 %vm402_vm1, %v382_v4 }
  0x36   :  { %1906 = vmatmul.msk.f32.gmra.mxu2 %vm386_vm2, %v356_v0  ;;  %1912 = vmatmul.msk.f32.gmra.mxu3 %vm386_vm2, %v356_v0 }
  0x37   :  { %1915 = vmatmul.msk.f32.vlgmr.msra.gmra.mxu0 %vm386_vm2, %v2204_v38  ;;  %1921 = vmatmul.msk.f32.vlgmr.msra.gmra.mxu1 %vm386_vm2, %v2204_v38 }
  0x3e   :  { %1907 = vmatmul.msk.f32.gmra.mxu2 %vm386_vm2, %v357_v1  ;;  %1913 = vmatmul.msk.f32.gmra.mxu3 %vm386_vm2, %v357_v1 }
  0x3f   :  { %1916 = vmatmul.msk.f32.gmra.mxu0 %vm386_vm2, %v2216_v48  ;;  %1922 = vmatmul.msk.f32.gmra.mxu1 %vm386_vm2, %v2216_v48 }
  0x46   :  { %1927 = vmatmul.msk.f32.vlgmr.msra.gmra.mxu2 %vm386_vm2, %v2204_v38  ;;  %1933 = vmatmul.msk.f32.vlgmr.msra.gmra.mxu3 %vm386_vm2, %v2204_v38 }
  0x47   :  { %1917 = vmatmul.msk.f32.gmra.mxu0 %vm386_vm2, %v2231_v59  ;;  %1923 = vmatmul.msk.f32.gmra.mxu1 %vm386_vm2, %v2231_v59 }
  0x4e   :  { %1928 = vmatmul.msk.f32.gmra.mxu2 %vm386_vm2, %v2216_v48  ;;  %1934 = vmatmul.msk.f32.gmra.mxu3 %vm386_vm2, %v2216_v48 }
  0x4f   :  { %1918 = vmatmul.msk.f32.gmra.mxu0 %vm386_vm2, %v356_v0  ;;  %1924 = vmatmul.msk.f32.gmra.mxu1 %vm386_vm2, %v356_v0 }
  0x56   :  { %1929 = vmatmul.msk.f32.gmra.mxu2 %vm386_vm2, %v2231_v59  ;;  %1935 = vmatmul.msk.f32.gmra.mxu3 %vm386_vm2, %v2231_v59 }
  0x57   :  { %1919 = vmatmul.msk.f32.gmra.mxu0 %vm386_vm2, %v357_v1  ;;  %1925 = vmatmul.msk.f32.gmra.mxu1 %vm386_vm2, %v357_v1 }
  0x5e   :  { %1930 = vmatmul.msk.f32.gmra.mxu2 %vm386_vm2, %v356_v0  ;;  %1936 = vmatmul.msk.f32.gmra.mxu3 %vm386_vm2, %v356_v0 }
  0x5f   :  { %1939 = vmatmul.msk.f32.vlgmr.msrb.gmra.mxu0 %vm386_vm2, %v2204_v38  ;;  %1945 = vmatmul.msk.f32.vlgmr.msrb.gmra.mxu1 %vm386_vm2, %v2204_v38 }
  0x66   :  { %1931 = vmatmul.msk.f32.gmra.mxu2 %vm386_vm2, %v357_v1  ;;  %1937 = vmatmul.msk.f32.gmra.mxu3 %vm386_vm2, %v357_v1 }
  0x67   :  { %1940 = vmatmul.msk.f32.gmra.mxu0 %vm386_vm2, %v2216_v48  ;;  %1946 = vmatmul.msk.f32.gmra.mxu1 %vm386_vm2, %v2216_v48 }
  0x6e   :  { %1951 = vmatmul.msk.f32.vlgmr.msrb.gmra.mxu2 %vm386_vm2, %v2204_v38  ;;  %1957 = vmatmul.msk.f32.vlgmr.msrb.gmra.mxu3 %vm386_vm2, %v2204_v38 }
  0x6f   :  { %1941 = vmatmul.msk.f32.gmra.mxu0 %vm386_vm2, %v2231_v59  ;;  %1947 = vmatmul.msk.f32.gmra.mxu1 %vm386_vm2, %v2231_v59 }
  0x76   :  { %1952 = vmatmul.msk.f32.gmra.mxu2 %vm386_vm2, %v2216_v48  ;;  %1958 = vmatmul.msk.f32.gmra.mxu3 %vm386_vm2, %v2216_v48 }
  0x77   :  { %1942 = vmatmul.msk.f32.gmra.mxu0 %vm386_vm2, %v356_v0  ;;  %1948 = vmatmul.msk.f32.gmra.mxu1 %vm386_vm2, %v356_v0 }
  0x7e   :  { %1953 = vmatmul.msk.f32.gmra.mxu2 %vm386_vm2, %v2231_v59  ;;  %1959 = vmatmul.msk.f32.gmra.mxu3 %vm386_vm2, %v2231_v59 }
  0x7f   :  { %1943 = vmatmul.msk.f32.gmra.mxu0 %vm386_vm2, %v357_v1  ;;  %1949 = vmatmul.msk.f32.gmra.mxu1 %vm386_vm2, %v357_v1 }
  0x86   :  { %1954 = vmatmul.msk.f32.gmra.mxu2 %vm386_vm2, %v356_v0  ;;  %1960 = vmatmul.msk.f32.gmra.mxu3 %vm386_vm2, %v356_v0 }
  0x8d   :  { %v165_v8 = vpop.f32.mrf.mxu0  ;;  %v185_v9 = vpop.f32.mrf.mxu1 }
  0x8e   :  { %774 = vmatpush.msra.mxu0 %v165_v8  ;;  %806 = vmatpush.msra.mxu1 %v185_v9 }
  0x8f   :  { %1962 = vmatmul.msk.f32.vlgmr.msra.gmra.mxu0 %vm743_vm3, %v2325_v7  ;;  %1967 = vmatmul.msk.f32.vlgmr.msra.gmra.mxu1 %vm743_vm3, %v2325_v7 }
  0x90   :  { %1955 = vmatmul.msk.f32.gmra.mxu2 %vm386_vm2, %v357_v1  ;;  %1961 = vmatmul.msk.f32.gmra.mxu3 %vm386_vm2, %v357_v1 }
  0x97   :  { %v205_v11 = vpop.f32.mrf.mxu0  ;;  %v225_v12 = vpop.f32.mrf.mxu1  ;;  %1963 = vmatmul.msk.f32.gmra.mxu0 %vm743_vm3, %v2336_v10  ;;  %1968 = vmatmul.msk.f32.gmra.mxu1 %vm743_vm3, %v2336_v10 }
  0x98   :  { %838 = vmatpush.msra.mxu2 %v205_v11  ;;  %870 = vmatpush.msra.mxu3 %v225_v12 }
  0x99   :  { %1972 = vmatmul.msk.f32.vlgmr.msra.gmra.mxu2 %vm743_vm3, %v2325_v7  ;;  %1977 = vmatmul.msk.f32.vlgmr.msra.gmra.mxu3 %vm743_vm3, %v2325_v7  ;;  %v285_v13 = vpop.f32.mrf.mxu2  ;;  %v305_v14 = vpop.f32.mrf.mxu3 }
  0x9a   :  { %966 = vmatpush.msrb.mxu2 %v285_v13  ;;  %998 = vmatpush.msrb.mxu3 %v305_v14 }
  0x9f   :  { %1964 = vmatmul.msk.f32.gmra.mxu0 %vm743_vm3, %v2349_v15  ;;  %1969 = vmatmul.msk.f32.gmra.mxu1 %vm743_vm3, %v2349_v15 }
  0xa1   :  { %1973 = vmatmul.msk.f32.gmra.mxu2 %vm743_vm3, %v2336_v10  ;;  %1978 = vmatmul.msk.f32.gmra.mxu3 %vm743_vm3, %v2336_v10  ;;  %v2359_v16 = vpop.f32.mrf.mxu2  ;;  %v2361_v17 = vpop.f32.mrf.mxu3 }
  0xa2   :  { %v245_v19 = vpop.f32.mrf.mxu0  ;;  %v265_v20 = vpop.f32.mrf.mxu1 }
  0xa3   :  { %934 = vmatpush.msrb.mxu1 %v265_v20  ;;  %902 = vmatpush.msrb.mxu0 %v245_v19 }
  0xa7   :  { %1965 = vmatmul.msk.f32.gmra.mxu0 %vm743_vm3, %v2366_v18  ;;  %1970 = vmatmul.msk.f32.gmra.mxu1 %vm743_vm3, %v2366_v18 }
  0xa9   :  { %1974 = vmatmul.msk.f32.gmra.mxu2 %vm743_vm3, %v2349_v15  ;;  %1979 = vmatmul.msk.f32.gmra.mxu3 %vm743_vm3, %v2349_v15  ;;  %v2376_v21 = vpop.f32.mrf.mxu2  ;;  %v2378_v22 = vpop.f32.mrf.mxu3 }
  0xac   :  { %v325_v24 = vpop.f32.mrf.mxu0  ;;  %v345_v25 = vpop.f32.mrf.mxu1 }
  0xad   :  { %1062 = vmatpush.msra.mxu1 %v345_v25  ;;  %1030 = vmatpush.msra.mxu0 %v325_v24 }
  0xaf   :  { %1966 = vmatmul.msk.f32.gmra.mxu0 %vm743_vm3, %v2383_v23  ;;  %1971 = vmatmul.msk.f32.gmra.mxu1 %vm743_vm3, %v2383_v23 }
  0xb1   :  { %1975 = vmatmul.msk.f32.gmra.mxu2 %vm743_vm3, %v2366_v18  ;;  %1980 = vmatmul.msk.f32.gmra.mxu3 %vm743_vm3, %v2366_v18  ;;  %v2393_v26 = vpop.f32.mrf.mxu2  ;;  %v2395_v27 = vpop.f32.mrf.mxu3 }
  0xb4   :  { %v2397_v28 = vpop.f32.mrf.mxu0  ;;  %v2399_v29 = vpop.f32.mrf.mxu1 }
  0xb7   :  { %1982 = vmatmul.msk.f32.vlgmr.msrb.gmra.mxu0 %vm743_vm3, %v2325_v7  ;;  %1987 = vmatmul.msk.f32.vlgmr.msrb.gmra.mxu1 %vm743_vm3, %v2325_v7 }
  0xb9   :  { %1976 = vmatmul.msk.f32.gmra.mxu2 %vm743_vm3, %v2383_v23  ;;  %1981 = vmatmul.msk.f32.gmra.mxu3 %vm743_vm3, %v2383_v23  ;;  %v2409_v30 = vpop.f32.mrf.mxu2  ;;  %v2411_v31 = vpop.f32.mrf.mxu3 }
  0xbc   :  { %v2413_v32 = vpop.f32.mrf.mxu0  ;;  %v2415_v33 = vpop.f32.mrf.mxu1 }
  0xbf   :  { %1983 = vmatmul.msk.f32.gmra.mxu0 %vm743_vm3, %v2336_v10  ;;  %1988 = vmatmul.msk.f32.gmra.mxu1 %vm743_vm3, %v2336_v10 }
  0xc1   :  { %1992 = vmatmul.msk.f32.vlgmr.msrb.gmra.mxu2 %vm743_vm3, %v2325_v7  ;;  %1997 = vmatmul.msk.f32.vlgmr.msrb.gmra.mxu3 %vm743_vm3, %v2325_v7  ;;  %v2425_v34 = vpop.f32.mrf.mxu2  ;;  %v2427_v35 = vpop.f32.mrf.mxu3 }
  0xc4   :  { %v2429_v36 = vpop.f32.mrf.mxu0  ;;  %v2431_v37 = vpop.f32.mrf.mxu1 }
  0xc7   :  { %1984 = vmatmul.msk.f32.gmra.mxu0 %vm743_vm3, %v2349_v15  ;;  %1989 = vmatmul.msk.f32.gmra.mxu1 %vm743_vm3, %v2349_v15 }
  0xc9   :  { %1993 = vmatmul.msk.f32.gmra.mxu2 %vm743_vm3, %v2336_v10  ;;  %1998 = vmatmul.msk.f32.gmra.mxu3 %vm743_vm3, %v2336_v10  ;;  %v2441_v38 = vpop.f32.mrf.mxu2  ;;  %v2443_v39 = vpop.f32.mrf.mxu3 }
  0xcc   :  { %v2445_v40 = vpop.f32.mrf.mxu0  ;;  %v2447_v41 = vpop.f32.mrf.mxu1 }
  0xcf   :  { %1985 = vmatmul.msk.f32.gmra.mxu0 %vm743_vm3, %v2366_v18  ;;  %1990 = vmatmul.msk.f32.gmra.mxu1 %vm743_vm3, %v2366_v18 }
  0xd1   :  { %1994 = vmatmul.msk.f32.gmra.mxu2 %vm743_vm3, %v2349_v15  ;;  %1999 = vmatmul.msk.f32.gmra.mxu3 %vm743_vm3, %v2349_v15  ;;  %v2457_v42 = vpop.f32.mrf.mxu2  ;;  %v2459_v43 = vpop.f32.mrf.mxu3 }
  0xd4   :  { %v2461_v44 = vpop.f32.mrf.mxu0  ;;  %v2463_v45 = vpop.f32.mrf.mxu1 }
  0xd7   :  { %1986 = vmatmul.msk.f32.gmra.mxu0 %vm743_vm3, %v2383_v23  ;;  %1991 = vmatmul.msk.f32.gmra.mxu1 %vm743_vm3, %v2383_v23 }
  0xd9   :  { %1995 = vmatmul.msk.f32.gmra.mxu2 %vm743_vm3, %v2366_v18  ;;  %2000 = vmatmul.msk.f32.gmra.mxu3 %vm743_vm3, %v2366_v18  ;;  %v2473_v46 = vpop.f32.mrf.mxu2  ;;  %v2475_v47 = vpop.f32.mrf.mxu3 }
  0xdc   :  { %v2477_v48 = vpop.f32.mrf.mxu0  ;;  %v2479_v49 = vpop.f32.mrf.mxu1 }
  0xdf   :  { %2002 = vmatmul.msk.f32.vlgmr.msra.gmra.mxu0 %vm743_vm3, %v2325_v7  ;;  %2007 = vmatmul.msk.f32.vlgmr.msra.gmra.mxu1 %vm743_vm3, %v2325_v7 }
  0xe1   :  { %1996 = vmatmul.msk.f32.gmra.mxu2 %vm743_vm3, %v2383_v23  ;;  %2001 = vmatmul.msk.f32.gmra.mxu3 %vm743_vm3, %v2383_v23  ;;  %v2489_v50 = vpop.f32.mrf.mxu2  ;;  %v2491_v51 = vpop.f32.mrf.mxu3 }
  0xe4   :  { %v2493_v52 = vpop.f32.mrf.mxu0  ;;  %v2495_v53 = vpop.f32.mrf.mxu1 }
  0xe7   :  { %2003 = vmatmul.msk.f32.gmra.mxu0 %vm743_vm3, %v2336_v10  ;;  %2008 = vmatmul.msk.f32.gmra.mxu1 %vm743_vm3, %v2336_v10 }
  0xe9   :  { %v2501_v54 = vpop.f32.mrf.mxu2  ;;  %v2503_v55 = vpop.f32.mrf.mxu3 }
  0xec   :  { %v2505_v56 = vpop.f32.mrf.mxu0  ;;  %v2507_v57 = vpop.f32.mrf.mxu1 }
  0xed   :  { %3488 = vst [vmem:[#allocation8_spill] sm:$0xff] %v2505_v56 }
  0xee   :  { %3489 = vst [vmem:[#allocation9_spill] sm:$0xff] %v2507_v57 }
  0xef   :  { %2004 = vmatmul.msk.f32.gmra.mxu0 %vm743_vm3, %v2349_v15  ;;  %2009 = vmatmul.msk.f32.gmra.mxu1 %vm743_vm3, %v2349_v15 }
  0xf1   :  { %v2513_v58 = vpop.f32.mrf.mxu2  ;;  %v2515_v59 = vpop.f32.mrf.mxu3 }
  0xf4   :  { %v2521_v60 = vpop.f32.mrf.mxu0  ;;  %v2523_v61 = vpop.f32.mrf.mxu1 }
  0xf7   :  { %2005 = vmatmul.msk.f32.gmra.mxu0 %vm743_vm3, %v2366_v18  ;;  %2010 = vmatmul.msk.f32.gmra.mxu1 %vm743_vm3, %v2366_v18 }
  0xf9   :  { %v2525_v62 = vpop.f32.mrf.mxu2  ;;  %v2531_v63 = vpop.f32.mrf.mxu3 }
  0xfc   :  { %v2535_v1 = vpop.f32.mrf.mxu0  ;;  %v2537_v2 = vpop.f32.mrf.mxu1 }
  0xff   :  { %2006 = vmatmul.msk.f32.gmra.mxu0 %vm743_vm3, %v2383_v23  ;;  %2011 = vmatmul.msk.f32.gmra.mxu1 %vm743_vm3, %v2383_v23 }
 0x101   :  { %v2533_v0 = vpop.f32.mrf.mxu2  ;;  %v2541_v4 = vpop.f32.mrf.mxu3 }
 0x102   :  { %3490 = vst [vmem:[#allocation10_spill] sm:$0xff] %v2533_v0 }
 0x103   :  { %3491 = vst [vmem:[#allocation11_spill] sm:$0xff] %v2541_v4 }
 0x109   :  { %v2539_v3 = vpop.f32.mrf.mxu2  ;;  %v2549_v13 = vpop.f32.mrf.mxu3 }
 0x10c   :  { %v776_v5 = vpop.f32.mrf.mxu0  ;;  %v808_v6 = vpop.f32.mrf.mxu1 }
 0x10d   :  { %v777_v7 = vadd.f32 %v776_v5, %v2359_v16  ;;  %v809_v14 = vadd.f32 %v808_v6, %v2361_v17 }
 0x10f   :  { %1079 = vrot.lane.b32.xlu0 %v777_v7, %s2125_s4 }
 0x113   :  { %v2545_v8 = vpop.f32.mrf.mxu2  ;;  %v2559_v19 = vpop.f32.mrf.mxu3 }
 0x114   :  { %v779_v9 = vpop.f32.mrf.mxu0  ;;  %v811_v10 = vpop.f32.mrf.mxu1 }
 0x115   :  { %v780_v11 = vadd.f32 %v779_v9, %v2376_v21  ;;  %v812_v12 = vadd.f32 %v811_v10, %v2378_v22 }
 0x117   :  { %1134 = vrot.lane.b32.xlu2 %v812_v12, %s2126_s11  ;;  %1132 = vrot.lane.b32.xlu1 %v780_v11, %s2126_s11 }
 0x118   :  { %1081 = vrot.lane.b32.xlu0 %v809_v14, %s2125_s4 }
 0x11c   :  { %v840_v15 = vpop.f32.mrf.mxu2  ;;  %v2555_v16 = vpop.f32.mrf.mxu0 }
 0x11d   :  { %v2557_v18 = vpop.f32.mrf.mxu1  ;;  %v872_v24 = vpop.f32.mrf.mxu3 }
 0x11e   :  { %v873_v12 = vadd.f32 %v872_v24, %v2399_v29 }
 0x124   :  { %v2561_v20 = vpop.f32.mrf.mxu2  ;;  %v785_v21 = vpop.f32.mrf.mxu0 }
 0x125   :  { %v817_v22 = vpop.f32.mrf.mxu1  ;;  %v786_v17 = vadd.f32 %v785_v21, %v2409_v30  ;;  %v875_v9 = vpop.f32.mrf.mxu3 }
 0x126   :  { %v818_v23 = vadd.f32 %v817_v22, %v2411_v31  ;;  %v876_v22 = vadd.f32 %v875_v9, %v2415_v33  ;;  %v841_v33 = vadd.f32 %v840_v15, %v2397_v28 }
 0x127   :  { %1193 = vrot.lane.b32.xlu0 %v786_v17, %s2127_s12 }
 0x128   :  { %1195 = vrot.lane.b32.xlu1 %v818_v23, %s2127_s12 }
 0x12c   :  { %v2567_v25 = vpop.f32.mrf.mxu2  ;;  %v788_v5 = vpop.f32.mrf.mxu0 }
 0x12d   :  { %v820_v6 = vpop.f32.mrf.mxu1  ;;  %v789_v7 = vadd.f32 %v788_v5, %v2425_v34  ;;  %v2576_v34 = vpop.f32.mrf.mxu3 }
 0x12e   :  { %v821_v56 = vadd.f32 %v820_v6, %v2427_v35 }
 0x12f   :  { %1244 = vrot.lane.b32.xlu0 %v789_v7, %s2128_s13 }
 0x134   :  { %v849_v10 = vpop.f32.mrf.mxu2  ;;  %v904_v31 = vpop.f32.mrf.mxu0 }
 0x135   :  { %v850_v30 = vadd.f32 %v849_v10, %v2445_v40  ;;  %v936_v11 = vpop.f32.mrf.mxu1  ;;  %v2583_v40 = vpop.f32.mrf.mxu3 }
 0x136   :  { %v937_v6 = vadd.f32 %v936_v11, %v2443_v39  ;;  %v844_v11 = vadd.f32 %v2561_v20, %v2413_v32 }
 0x137   :  { %1197 = vrot.lane.b32.xlu2 %v850_v30, %s2127_s12  ;;  %1085 = vrot.lane.b32.xlu0 %v873_v12, %s2125_s4 }
 0x13c   :  { %v907_v14 = vpop.f32.mrf.mxu0  ;;  %v852_v9 = vpop.f32.mrf.mxu2 }
 0x13d   :  { %v939_v21 = vpop.f32.mrf.mxu1  ;;  %v884_v7 = vpop.f32.mrf.mxu3  ;;  %v853_v35 = vadd.f32 %v852_v9, %v2461_v44 }
 0x13f   :  { %1138 = vrot.lane.b32.xlu0 %v876_v22, %s2126_s11 }
 0x144   :  { %v2579_v17 = vpop.f32.mrf.mxu0 }
 0x145   :  { %v2581_v23 = vpop.f32.mrf.mxu1  ;;  %v1000_v12 = vpop.f32.mrf.mxu3 }
 0x14c   :  { %v913_v5 = vpop.f32.mrf.mxu0 }
 0x14d   :  { %v945_v29 = vpop.f32.mrf.mxu1  ;;  %v914_v24 = vadd.f32 %v913_v5, %v2489_v50  ;;  %v968_v50 = vpop.f32.mrf.mxu2 }
 0x14e   :  { %v1003_v28 = vpop.f32.mrf.mxu3  ;;  %v946_v9 = vadd.f32 %v945_v29, %v2491_v51  ;;  %v969_v20 = vadd.f32 %v968_v50, %v2477_v48 }
 0x14f   :  { %1201 = vrot.lane.b32.xlu0 %v914_v24, %s2127_s12 }
 0x154   :  { %v916_v10 = vpop.f32.mrf.mxu0 }
 0x155   :  { %v948_v30 = vpop.f32.mrf.mxu1  ;;  %v917_v51 = vadd.f32 %v916_v10, %v2501_v54 }
 0x156   :  { %v949_v0 = vadd.f32 %v948_v30, %v2503_v55  ;;  %v971_v55 = vpop.f32.mrf.mxu2  ;;  %v940_v30 = vadd.f32 %v939_v21, %v2459_v43 }
 0x157   :  { %1083 = vrot.lane.b32.xlu0 %v841_v33, %s2125_s4  ;;  %v885_v33 = vadd.f32 %v884_v7, %v2463_v45  ;;  %v908_v7 = vadd.f32 %v907_v14, %v2457_v42 }
 0x15c   :  { %v1032_v22 = vpop.f32.mrf.mxu0 }
 0x15d   :  { %v1064_v4 = vpop.f32.mrf.mxu1  ;;  %v1033_v54 = vadd.f32 %v1032_v22, %v2513_v58 }
 0x15e   :  { %v1065_v57 = vadd.f32 %v1064_v4, %v2515_v59  ;;  %v1004_v4 = vadd.f32 %v1003_v28, %v2495_v53 }
 0x15f   :  { %1254 = vrot.lane.b32.xlu0 %v949_v0, %s2128_s13  ;;  %v905_v0 = vadd.f32 %v904_v31, %v2441_v38  ;;  %v2614_v31 = vpop.f32.mrf.mxu2 }
 0x160   :  { %1097 = vrot.lane.b32.xlu1 %v1065_v57, %s2125_s4 }
 0x164   :  { %v1035_v5 = vpop.f32.mrf.mxu0 }
 0x165   :  { %v1067_v24 = vpop.f32.mrf.mxu1 }
 0x166   :  { %v1068_v15 = vadd.f32 %v1067_v24, %v2531_v63  ;;  %v2606_v63 = vpop.f32.mrf.mxu3 }
 0x167   :  { %1250 = vrot.lane.b32.xlu0 %v885_v33, %s2128_s13  ;;  %v977_v42 = vpop.f32.mrf.mxu2 }
 0x168   :  { %1150 = vrot.lane.b32.xlu2 %v1068_v15, %s2126_s11  ;;  %1246 = vrot.lane.b32.xlu1 %v821_v56, %s2128_s13  ;;  %v978_v14 = vadd.f32 %v977_v42, %v2521_v60  ;;  %v882_v60 = vadd.f32 %v2583_v40, %v2447_v41  ;;  %v1036_v41 = vadd.f32 %v1035_v5, %v2525_v62 }
 0x16c   :  { %v2599_v57 = vpop.f32.mrf.mxu0 }
 0x16d   :  { %v2601_v59 = vpop.f32.mrf.mxu1 }
 0x16e   :  { %v1009_v44 = vpop.f32.mrf.mxu3 }
 0x16f   :  { %1146 = vrot.lane.b32.xlu0 %v1004_v4, %s2126_s11  ;;  %v980_v43 = vpop.f32.mrf.mxu2  ;;  %v1010_v62 = vadd.f32 %v1009_v44, %v2523_v61  ;;  %v2679_v61 = vld [vmem:[%s3451_s0 + $0x8] sm:$0xff]  ;;  %v783_v44 = vadd.f32 %v2555_v16, %v2393_v26 }
 0x170   :  { %1248 = vrot.lane.b32.xlu2 %v853_v35, %s2128_s13  ;;  %1087 = vrot.lane.b32.xlu1 %v905_v0, %s2125_s4  ;;  %vm64_vm6 = vcmp.ge.s32.totalorder %v2679_v61, 1  ;;  %vm3483_vm7 = vcmp.ge.s32.totalorder %v2679_v61, 2  ;;  %v2695_v35 = vld [vmem:[%s3451_s0] sm:$0xff]  ;;  %vm3482_vm11 = vcmp.lt.s32.totalorder %v2679_v61, 639  ;;  %vm3467_vm15 = vcmp.lt.s32.totalorder %v2679_v61, 638 }
 0x171   :  { %vm3466_vm8 = vcmp.ge.s32.totalorder %v2695_v35, 1  ;;  %vm3465_vm9 = vcmp.ge.s32.totalorder %v2695_v35, 2  ;;  %vm3464_vm12 = vcmp.lt.s32.totalorder %v2695_v35, 639  ;;  %vm3462_vm14 = vcmp.lt.s32.totalorder %v2695_v35, 638 }
 0x174   :  { %v1041_v45 = vpop.f32.mrf.mxu0 }
 0x175   :  { %v1073_v56 = vpop.f32.mrf.mxu1  ;;  %v1042_v48 = vadd.f32 %v1041_v45, %v2539_v3 }
 0x176   :  { %v1074_v38 = vadd.f32 %v1073_v56, %v2549_v13  ;;  %v1012_v13 = vpop.f32.mrf.mxu3 }
 0x177   :  { %v1013_v24 = vadd.f32 %v1012_v13, %v2537_v2  ;;  %v1001_v2 = vadd.f32 %v1000_v12, %v2479_v49  ;;  %v815_v13 = vadd.f32 %v2557_v18, %v2395_v27 }
 0x178   :  { %1089 = vrot.lane.b32.xlu2 %v937_v6, %s2125_s4  ;;  %1140 = vrot.lane.b32.xlu1 %v908_v7, %s2126_s11 }
 0x179   :  { %1211 = vrot.lane.b32.xlu0 %v1074_v38, %s2127_s12 }
 0x17c   :  { %v1044_v53 = vpop.f32.mrf.mxu0 }
 0x17d   :  { %v1045_v39 = vadd.f32 %v1044_v53, %v2545_v8  ;;  %v981_v8 = vadd.f32 %v980_v43, %v2535_v1  ;;  %v972_v1 = vadd.f32 %v971_v55, %v2493_v52  ;;  %v1076_v49 = vpop.f32.mrf.mxu1  ;;  %v2659_v52 = vpop.permute.xlu2 %1134 }
 0x17e   :  { %v1077_v58 = vadd.f32 %v1076_v49, %v2559_v19  ;;  %v1099_v19 = vlaneseq }
 0x180   :  { %1142 = vrot.lane.b32.xlu2 %v940_v30, %s2126_s11  ;;  %1203 = vrot.lane.b32.xlu1 %v946_v9, %s2127_s12  ;;  %v2671_v5 = vand.u32 127, %v1099_v19  ;;  %v2767_v19 = vld [vmem:[%s3451_s0 + $0x20] sm:$0xff] }
 0x181   :  { %1260 = vrot.lane.b32.xlu0 %v1045_v39, %s2128_s13  ;;  %v1080_v32 = vpop.permute.xlu0 %1079  ;;  %vm3459_vm0 = vcmp.ge.s32.totalorder %v2767_v19, 1  ;;  %vm3460_vm1 = vcmp.ge.s32.totalorder %v2767_v19, 2  ;;  %vm3461_vm2 = vcmp.lt.s32.totalorder %v2767_v19, 639 }
 0x182   :  { %vm1152_vm4 = vcmp.lt.s32.totalorder %v2671_v5, 1  ;;  %vm1101_vm5 = vcmp.lt.s32.totalorder %v2671_v5, 2  ;;  %vm1213_vm10 = vcmp.lt.s32.totalorder %v2671_v5, 127  ;;  %vm1264_vm13 = vcmp.lt.s32.totalorder %v2671_v5, 126 }
 0x188   :  { %1205 = vrot.lane.b32.xlu2 %v978_v14, %s2127_s12  ;;  %1136 = vrot.lane.b32.xlu1 %v844_v11, %s2126_s11 }
 0x189   :  { %1258 = vrot.lane.b32.xlu0 %v1013_v24, %s2128_s13  ;;  %v1133_v22 = vpop.permute.xlu1 %1132 }
 0x18a   :  { %v2643_v21 = vpop.permute.xlu0 %1081  ;;  %v1161_v55 = vsel %vm1152_vm4, %v1133_v22, %v2659_v52 }
 0x18b   :  { %v1110_v0 = vsel %vm1101_vm5, %v1080_v32, %v2643_v21  ;;  %v1164_v45 = vsel %vm64_vm6, %v1161_v55, 0.0 }
 0x18c   :  { %v1113_v56 = vsel %vm3483_vm7, %v1110_v0, 0.0 }
 0x18d   :  { %v1174_v9 = vadd.f32 %v1164_v45, %v1113_v56  ;;  %v2784_v56 = vld [vmem:[%s3457_s6 + $0x8] sm:$0xff] }
 0x18f   :  { %v1184_v24 = vadd.f32 %v1174_v9, %v815_v13 }
 0x190   :  { %1252 = vrot.lane.b32.xlu2 %v917_v51, %s2128_s13  ;;  %1256 = vrot.lane.b32.xlu1 %v981_v8, %s2128_s13 }
 0x191   :  { %v2663_v10 = vpop.permute.xlu2 %1197 }
 0x198   :  { %1199 = vrot.lane.b32.xlu2 %v882_v60, %s2127_s12  ;;  %1093 = vrot.lane.b32.xlu1 %v1001_v2, %s2125_s4 }
 0x199   :  { %v2649_v40 = vpop.permute.xlu0 %1193 }
 0x19a   :  { %v1196_v28 = vpop.permute.xlu1 %1195 }
 0x19b   :  { %v1221_v39 = vsel %vm1213_vm10, %v1196_v28, %v2663_v10  ;;  %v1222_v26 = vsel %vm1213_vm10, %v2649_v40, %v1196_v28 }
 0x19c   :  { %v1225_v14 = vsel %vm3482_vm11, %v1221_v39, 0.0  ;;  %v1224_v27 = vsel %vm3464_vm12, %v1222_v26, 0.0 }
 0x19d   :  { %v1235_v51 = vadd.f32 %v1225_v14, %v1184_v24  ;;  %v2829_v24 = vld [vmem:[%s3451_s0 + $0x28] sm:$0xff] }
 0x1a0   :  { %1095 = vrot.lane.b32.xlu2 %v1033_v54, %s2125_s4  ;;  %1091 = vrot.lane.b32.xlu1 %v969_v20, %s2125_s4 }
 0x1a1   :  { %v2657_v29 = vpop.permute.xlu0 %1244 }
 0x1a8   :  { %1144 = vrot.lane.b32.xlu2 %v972_v1, %s2126_s11  ;;  %1148 = vrot.lane.b32.xlu1 %v1036_v41, %s2126_s11 }
 0x1a9   :  { %v2665_v12 = vpop.permute.xlu0 %1085 }
 0x1b0   :  { %1209 = vrot.lane.b32.xlu2 %v1042_v48, %s2127_s12  ;;  %1262 = vrot.lane.b32.xlu1 %v1077_v58, %s2128_s13 }
 0x1b1   :  { %v2669_v50 = vpop.permute.xlu0 %1138 }
 0x1b8   :  { %1207 = vrot.lane.b32.xlu2 %v1010_v62, %s2127_s12 }
 0x1c1   :  { %v2682_v33 = vpop.permute.xlu0 %1201 }
 0x1c2   :  { %v2667_v3 = vpop.permute.xlu2 %1150 }
 0x1c3   :  { %v1162_v4 = vsel %vm1152_vm4, %v2667_v3, %v1133_v22  ;;  %v2758_v22 = vld [vmem:[%s3457_s6] sm:$0xff] }
 0x1c4   :  { %v1163_v53 = vsel %vm3466_vm8, %v1162_v4, 0.0 }
 0x1c9   :  { %v2730_v16 = vpop.permute.xlu0 %1083 }
 0x1ca   :  { %v2673_v15 = vpop.permute.xlu2 %1248 }
 0x1d1   :  { %v2751_v48 = vpop.permute.xlu0 %1254 }
 0x1d2   :  { %v2707_v6 = vpop.permute.xlu2 %1089  ;;  %v2709_v7 = vpop.permute.xlu1 %1097 }
 0x1d3   :  { %v1111_v38 = vsel %vm1101_vm5, %v2709_v7, %v1080_v32 }
 0x1d4   :  { %v1112_v30 = vsel %vm3465_vm9, %v1111_v38, 0.0 }
 0x1d5   :  { %v1173_v42 = vadd.f32 %v1163_v53, %v1112_v30  ;;  %v911_v30 = vadd.f32 %v2579_v17, %v2473_v46  ;;  %v2813_v17 = vld [vmem:[%s3457_s6 + $0x10] sm:$0xff] }
 0x1d7   :  { %v1183_v11 = vadd.f32 %v1173_v42, %v783_v44  ;;  %v2800_v42 = vld [vmem:[%s3451_s0 + $0x10] sm:$0xff] }
 0x1d8   :  { %vm3471_vm12 = vcmp.ge.s32.totalorder %v2800_v42, 1  ;;  %vm3477_vm8 = vcmp.lt.s32.totalorder %v2800_v42, 639 }
 0x1d9   :  { %v1234_v8 = vadd.f32 %v1224_v27, %v1183_v11  ;;  %v2772_v0 = vpop.permute.xlu0 %1250  ;;  %v2818_v11 = vld [vmem:[%s3451_s0 + $0x18] sm:$0xff] }
 0x1da   :  { %v2739_v18 = vpop.permute.xlu2 %1142  ;;  %v1247_v43 = vpop.permute.xlu1 %1246  ;;  %vm66_vm9 = vcmp.ge.s32.totalorder %v2818_v11, 1 }
 0x1db   :  { %v1272_v32 = vsel %vm1264_vm13, %v1247_v43, %v2673_v15  ;;  %v1273_v60 = vsel %vm1264_vm13, %v2657_v29, %v1247_v43 }
 0x1dc   :  { %v1275_v2 = vsel %vm3462_vm14, %v1273_v60, 0.0  ;;  %v1276_v20 = vsel %vm3467_vm15, %v1272_v32, 0.0  ;;  %vm56_vm14 = vcmp.ge.s32.totalorder %v2818_v11, 2  ;;  %v1108_v32 = vsel %vm1101_vm5, %v2730_v16, %v2665_v12 }
 0x1dd   :  { %v1285_v54 = vadd.f32 %v1275_v2, %v1234_v8  ;;  %v1286_v1 = vadd.f32 %v1276_v20, %v1235_v51  ;;  %v1109_v60 = vsel %vm1101_vm5, %v2643_v21, %v2730_v16  ;;  %v847_v20 = vadd.f32 %v2567_v25, %v2429_v36 }
 0x1de   :  { %vm3473_vm15 = vcmp.lt.s32.totalorder %v2818_v11, 639 }
 0x1df   :  { %v1295_v41 = vmax.f32 %v1285_v54, 0.0  ;;  %v1296_v49 = vmax.f32 %v1286_v1, 0.0  ;;  %v879_v54 = vadd.f32 %v2576_v34, %v2431_v37  ;;  %v1115_v37 = vsel %vm56_vm14, %v1108_v32, 0.0 }
 0x1e1   :  { %1340 = vmatpush.msra.mxu2 %v1295_v41  ;;  %1372 = vmatpush.msra.mxu3 %v1296_v49  ;;  %v2831_v27 = vpop.permute.xlu0 %1146 }
 0x1e2   :  { %v2753_v58 = vpop.permute.xlu2 %1205  ;;  %v1088_v62 = vpop.permute.xlu1 %1087  ;;  %2017 = vmatmul.msk.f32.vlgmr.msra.gmra.mxu3 %vm743_vm3, %v2758_v22  ;;  %2012 = vmatmul.msk.f32.vlgmr.msra.gmra.mxu2 %vm743_vm3, %v2758_v22 }
 0x1e3   :  { %v1107_v4 = vsel %vm1101_vm5, %v2665_v12, %v1088_v62  ;;  %v1106_v1 = vsel %vm1101_vm5, %v1088_v62, %v2707_v6  ;;  %v2881_v62 = vld [vmem:[%s3457_s6 + $0x18] sm:$0xff] }
 0x1e4   :  { %v1116_v44 = vsel %vm3460_vm1, %v1107_v4, 0.0  ;;  %vm3470_vm1 = vcmp.ge.s32.totalorder %v2800_v42, 2 }
 0x1e5   :  { %v1114_v36 = vsel %vm3470_vm1, %v1109_v60, 0.0  ;;  %vm3472_vm1 = vcmp.lt.s32.totalorder %v2818_v11, 638  ;;  %v2927_v60 = vld [vmem:[%s3457_s6 + $0x20] sm:$0xff] }
 0x1ea   :  { %v2770_v28 = vpop.permute.xlu2 %1252  ;;  %v1141_v55 = vpop.permute.xlu1 %1140  ;;  %2018 = vmatmul.msk.f32.gmra.mxu3 %vm743_vm3, %v2784_v56  ;;  %2013 = vmatmul.msk.f32.gmra.mxu2 %vm743_vm3, %v2784_v56 }
 0x1eb   :  { %v1158_v45 = vsel %vm1152_vm4, %v2669_v50, %v1141_v55  ;;  %v1269_v13 = vsel %vm1264_vm13, %v2770_v28, %v2751_v48  ;;  %v1157_v8 = vsel %vm1152_vm4, %v1141_v55, %v2739_v18 }
 0x1ec   :  { %v1167_v38 = vsel %vm3459_vm0, %v1158_v45, 0.0  ;;  %vm3463_vm0 = vcmp.lt.s32.totalorder %v2767_v19, 638 }
 0x1ed   :  { %v1177_v53 = vadd.f32 %v1167_v38, %v1116_v44  ;;  %v1279_v51 = vsel %vm3463_vm0, %v1269_v13, 0.0  ;;  %vm3469_vm0 = vcmp.ge.s32.totalorder %v2829_v24, 2  ;;  %v2908_v13 = vpop.permute.xlu0 %1211 }
 0x1ee   :  { %v1117_v21 = vsel %vm3469_vm0, %v1106_v1, 0.0  ;;  %vm3476_vm0 = vcmp.lt.s32.totalorder %v2800_v42, 638 }
 0x1ef   :  { %v1187_v26 = vadd.f32 %v1177_v53, %v911_v30  ;;  %v943_v53 = vadd.f32 %v2581_v23, %v2475_v47  ;;  %v1271_v30 = vsel %vm1264_vm13, %v2673_v15, %v2772_v0  ;;  %v1270_v23 = vsel %vm1264_vm13, %v2772_v0, %v2770_v28 }
 0x1f0   :  { %v1278_v28 = vsel %vm3472_vm1, %v1270_v23, 0.0 }
 0x1f2   :  { %v1200_v9 = vpop.permute.xlu2 %1199  ;;  %v1204_v39 = vpop.permute.xlu1 %1203  ;;  %2019 = vmatmul.msk.f32.gmra.mxu3 %vm743_vm3, %v2813_v17  ;;  %2014 = vmatmul.msk.f32.gmra.mxu2 %vm743_vm3, %v2813_v17 }
 0x1f3   :  { %v1218_v46 = vsel %vm1213_vm10, %v2682_v33, %v1204_v39  ;;  %v1219_v4 = vsel %vm1213_vm10, %v1200_v9, %v2682_v33  ;;  %v1217_v33 = vsel %vm1213_vm10, %v1204_v39, %v2753_v58 }
 0x1f4   :  { %v1228_v14 = vsel %vm3461_vm2, %v1218_v46, 0.0  ;;  %vm3468_vm2 = vcmp.ge.s32.totalorder %v2829_v24, 1 }
 0x1f5   :  { %v1238_v43 = vadd.f32 %v1228_v14, %v1187_v26  ;;  %v1168_v12 = vsel %vm3468_vm2, %v1157_v8, 0.0  ;;  %vm3475_vm2 = vcmp.lt.s32.totalorder %v2829_v24, 639  ;;  %v1227_v26 = vsel %vm3473_vm15, %v1219_v4, 0.0  ;;  %v3492_v4 = vld [vmem:[#allocation8_spill] sm:$0xff] }
 0x1f6   :  { %v1178_v55 = vadd.f32 %v1168_v12, %v1117_v21  ;;  %v1229_v47 = vsel %vm3475_vm2, %v1217_v33, 0.0  ;;  %v2954_v21 = vld [vmem:[%s3451_s0 + $0x30] sm:$0xff] }
 0x1f7   :  { %v1289_v2 = vadd.f32 %v1279_v51, %v1238_v43  ;;  %vm3479_vm1 = vcmp.ge.s32.totalorder %v2954_v21, 1 }
 0x1f8   :  { %v1188_v15 = vadd.f32 %v1178_v55, %v943_v53 }
 0x1f9   :  { %v1299_v41 = vmax.f32 %v1289_v2, 0.0  ;;  %v1277_v2 = vsel %vm3476_vm0, %v1271_v30, 0.0  ;;  %vm79_vm0 = vcmp.lt.s32.totalorder %v2954_v21, 639 }
 0x1fa   :  { %v2867_v25 = vpop.permute.xlu2 %1095  ;;  %v1137_v34 = vpop.permute.xlu1 %1136  ;;  %2020 = vmatmul.msk.f32.gmra.mxu3 %vm743_vm3, %v2881_v62  ;;  %2015 = vmatmul.msk.f32.gmra.mxu2 %vm743_vm3, %v2881_v62  ;;  %v1239_v8 = vadd.f32 %v1229_v47, %v1188_v15 }
 0x1fb   :  { %v1159_v16 = vsel %vm1152_vm4, %v1137_v34, %v2669_v50  ;;  %v1160_v49 = vsel %vm1152_vm4, %v2659_v52, %v1137_v34  ;;  %1468 = vmatpush.msrb.mxu2 %v1299_v41  ;;  %v1220_v52 = vsel %vm1213_vm10, %v2663_v10, %v1200_v9 }
 0x1fc   :  { %v1165_v45 = vsel %vm3471_vm12, %v1160_v49, 0.0  ;;  %v1166_v50 = vsel %vm66_vm9, %v1159_v16, 0.0  ;;  %v1226_v39 = vsel %vm3477_vm8, %v1220_v52, 0.0  ;;  %vm3474_vm12 = vcmp.lt.s32.totalorder %v2829_v24, 638  ;;  %v2959_v16 = vld [vmem:[%s3451_s0 + $0x38] sm:$0xff] }
 0x1fd   :  { %v1175_v38 = vadd.f32 %v1165_v45, %v1114_v36  ;;  %v1176_v44 = vadd.f32 %v1166_v50, %v1115_v37  ;;  %v2939_v36 = vpop.permute.xlu0 %1260  ;;  %vm3480_vm15 = vcmp.ge.s32.totalorder %v2959_v16, 1  ;;  %vm3481_vm2 = vcmp.ge.s32.totalorder %v2959_v16, 2  ;;  %v3493_v50 = vld [vmem:[#allocation9_spill] sm:$0xff] }
 0x1fe   :  { %v975_v45 = vadd.f32 %v2614_v31, %v3492_v4  ;;  %v1007_v52 = vadd.f32 %v2606_v63, %v3493_v50  ;;  %vm3485_vm8 = vcmp.lt.s32.totalorder %v2959_v16, 639 }
 0x1ff   :  { %v1185_v10 = vadd.f32 %v1175_v38, %v847_v20  ;;  %v1186_v9 = vadd.f32 %v1176_v44, %v879_v54  ;;  %v2980_v44 = vld [vmem:[%s3451_s0 + $0x40] sm:$0xff] }
 0x200   :  { %vm3487_vm11 = vcmp.ge.s32.totalorder %v2980_v44, 1 }
 0x201   :  { %v1236_v46 = vadd.f32 %v1226_v39, %v1185_v10  ;;  %v1237_v14 = vadd.f32 %v1227_v26, %v1186_v9 }
 0x202   :  { %v1145_v43 = vpop.permute.xlu2 %1144  ;;  %v1257_v51 = vpop.permute.xlu1 %1256  ;;  %2021 = vmatmul.msk.f32.gmra.mxu3 %vm743_vm3, %v2927_v60  ;;  %2016 = vmatmul.msk.f32.gmra.mxu2 %vm743_vm3, %v2927_v60 }
 0x203   :  { %v1268_v32 = vsel %vm1264_vm13, %v2751_v48, %v1257_v51  ;;  %v1287_v20 = vadd.f32 %v1277_v2, %v1236_v46  ;;  %v1288_v54 = vadd.f32 %v1278_v28, %v1237_v14  ;;  %v1155_v49 = vsel %vm1152_vm4, %v1145_v43, %v2831_v27 }
 0x204   :  { %v1280_v0 = vsel %vm3474_vm12, %v1268_v32, 0.0  ;;  %v1156_v55 = vsel %vm1152_vm4, %v2739_v18, %v1145_v43  ;;  %vm3478_vm12 = vcmp.ge.s32.totalorder %v2954_v21, 2  ;;  %v1170_v30 = vsel %vm3480_vm15, %v1155_v49, 0.0 }
 0x205   :  { %v1290_v48 = vadd.f32 %v1280_v0, %v1239_v8  ;;  %v1297_v12 = vmax.f32 %v1287_v20, 0.0  ;;  %v1298_v41 = vmax.f32 %v1288_v54, 0.0  ;;  %v1259_v18 = vpop.permute.xlu0 %1258  ;;  %v1169_v53 = vsel %vm3479_vm1, %v1156_v55, 0.0  ;;  %v3494_v0 = vld [vmem:[#allocation10_spill] sm:$0xff]  ;;  %v3495_v20 = vld [vmem:[#allocation11_spill] sm:$0xff] }
 0x206   :  { %vm3484_vm1 = vcmp.lt.s32.totalorder %v2959_v16, 638  ;;  %vm89_vm15 = vcmp.lt.s32.totalorder %v2954_v21, 638  ;;  %v1266_v15 = vsel %vm1264_vm13, %v1259_v18, %v2939_v36  ;;  %v1267_v46 = vsel %vm1264_vm13, %v1257_v51, %v1259_v18 }
 0x207   :  { %v1300_v1 = vmax.f32 %v1290_v48, 0.0  ;;  %1404 = vmatpush.msrb.mxu0 %v1297_v12  ;;  %1436 = vmatpush.msrb.mxu1 %v1298_v41  ;;  %v1102_v32 = vsel %vm1101_vm5, %v2867_v25, %v2709_v7  ;;  %v1039_v48 = vadd.f32 %v2599_v57, %v3494_v0  ;;  %v1071_v54 = vadd.f32 %v2601_v59, %v3495_v20 }
 0x208   :  { %2022 = vmatmul.msk.f32.vlgmr.msrb.gmra.mxu0 %vm743_vm3, %v2758_v22  ;;  %2027 = vmatmul.msk.f32.vlgmr.msrb.gmra.mxu1 %vm743_vm3, %v2758_v22  ;;  %v1281_v12 = vsel %vm89_vm15, %v1267_v46, 0.0 }
 0x209   :  { %1500 = vmatpush.msrb.mxu3 %v1300_v1  ;;  %v1282_v1 = vsel %vm3484_vm1, %v1266_v15, 0.0 }
 0x20a   :  { %v2943_v37 = vpop.permute.xlu2 %1209  ;;  %v1094_v34 = vpop.permute.xlu1 %1093  ;;  %2037 = vmatmul.msk.f32.vlgmr.msrb.gmra.mxu3 %vm743_vm3, %v2758_v22  ;;  %2032 = vmatmul.msk.f32.vlgmr.msrb.gmra.mxu2 %vm743_vm3, %v2758_v22 }
 0x20b   :  { %v1103_v51 = vsel %vm1101_vm5, %v1094_v34, %v2867_v25 }
 0x210   :  { %2023 = vmatmul.msk.f32.gmra.mxu0 %vm743_vm3, %v2784_v56  ;;  %2028 = vmatmul.msk.f32.gmra.mxu1 %vm743_vm3, %v2784_v56 }
 0x212   :  { %v1208_v33 = vpop.permute.xlu2 %1207  ;;  %v1092_v38 = vpop.permute.xlu1 %1091  ;;  %2038 = vmatmul.msk.f32.gmra.mxu3 %vm743_vm3, %v2784_v56  ;;  %2033 = vmatmul.msk.f32.gmra.mxu2 %vm743_vm3, %v2784_v56 }
 0x213   :  { %v1104_v31 = vsel %vm1101_vm5, %v1092_v38, %v1094_v34  ;;  %v1105_v63 = vsel %vm1101_vm5, %v2707_v6, %v1092_v38  ;;  %v3006_v6 = vld [vmem:[%s3451_s0 + $0x48] sm:$0xff]  ;;  %v1215_v39 = vsel %vm1213_vm10, %v1208_v33, %v2943_v37  ;;  %v1216_v26 = vsel %vm1213_vm10, %v2753_v58, %v1208_v33  ;;  %s2129_s0 = smov [#allocation5]  }
 0x214   :  { %v1118_v10 = vsel %vm3478_vm12, %v1105_v63, 0.0  ;;  %v1119_v9 = vsel %vm3481_vm2, %v1104_v31, 0.0  ;;  %vm62_vm12 = vcmp.ge.s32.totalorder %v3006_v6, 2  ;;  %vm61_vm2 = vcmp.ge.s32.totalorder %v2980_v44, 2 }
 0x215   :  { %v1179_v47 = vadd.f32 %v1169_v53, %v1118_v10  ;;  %v1180_v23 = vadd.f32 %v1170_v30, %v1119_v9  ;;  %v1230_v58 = vsel %vm79_vm0, %v1216_v26, 0.0  ;;  %v1231_v8 = vsel %vm3485_vm8, %v1215_v39, 0.0 }
 0x216   :  { %vm3486_vm7 = vcmp.ge.s32.totalorder %v3006_v6, 1  ;;  %v1121_v34 = vsel %vm62_vm12, %v1102_v32, 0.0  ;;  %v1120_v49 = vsel %vm61_vm2, %v1103_v51, 0.0  ;;  %vm82_vm1 = vcmp.lt.s32.totalorder %v3006_v6, 639 }
 0x217   :  { %v1189_v14 = vadd.f32 %v1179_v47, %v975_v45  ;;  %v1190_v43 = vadd.f32 %v1180_v23, %v1007_v52  ;;  %v1223_v52 = vsel %vm1213_vm10, %v2908_v13, %v2649_v40  ;;  %vm81_vm8 = vcmp.lt.s32.totalorder %v2980_v44, 639 }
 0x218   :  { %2024 = vmatmul.msk.f32.gmra.mxu0 %vm743_vm3, %v2813_v17  ;;  %2029 = vmatmul.msk.f32.gmra.mxu1 %vm743_vm3, %v2813_v17  ;;  %v1214_v33 = vsel %vm1213_vm10, %v2943_v37, %v2908_v13  ;;  %v1233_v63 = vsel %vm82_vm1, %v1223_v52, 0.0 }
 0x219   :  { %v1240_v2 = vadd.f32 %v1230_v58, %v1189_v14  ;;  %v1241_v28 = vadd.f32 %v1231_v8, %v1190_v43  ;;  %v1232_v40 = vsel %vm81_vm8, %v1214_v33, 0.0 }
 0x21a   :  { %v1149_v7 = vpop.permute.xlu1 %1148  ;;  %2039 = vmatmul.msk.f32.gmra.mxu3 %vm743_vm3, %v2813_v17  ;;  %2034 = vmatmul.msk.f32.gmra.mxu2 %vm743_vm3, %v2813_v17 }
 0x21b   :  { %v1153_v25 = vsel %vm1152_vm4, %v1149_v7, %v2667_v3  ;;  %v1154_v57 = vsel %vm1152_vm4, %v2831_v27, %v1149_v7  ;;  %v1291_v41 = vadd.f32 %v1281_v12, %v1240_v2  ;;  %v1292_v59 = vadd.f32 %v1282_v1, %v1241_v28 }
 0x21c   :  { %v1171_v55 = vsel %vm3487_vm11, %v1154_v57, 0.0  ;;  %v1172_v3 = vsel %vm3486_vm7, %v1153_v25, 0.0  ;;  %vm91_vm7 = vcmp.lt.s32.totalorder %v2980_v44, 638  ;;  %vm92_vm11 = vcmp.lt.s32.totalorder %v3006_v6, 638 }
 0x21d   :  { %v1181_v27 = vadd.f32 %v1171_v55, %v1120_v49  ;;  %v1182_v4 = vadd.f32 %v1172_v3, %v1121_v34  ;;  %v1301_v45 = vmax.f32 %v1291_v41, 0.0  ;;  %v1302_v50 = vmax.f32 %v1292_v59, 0.0 }
 0x21f   :  { %v1191_v38 = vadd.f32 %v1181_v27, %v1039_v48  ;;  %v1192_v31 = vadd.f32 %v1182_v4, %v1071_v54  ;;  %1532 = vmatpush.msra.mxu0 %v1301_v45  ;;  %1564 = vmatpush.msra.mxu1 %v1302_v50 }
 0x220   :  { %2025 = vmatmul.msk.f32.gmra.mxu0 %vm743_vm3, %v2881_v62  ;;  %2030 = vmatmul.msk.f32.gmra.mxu1 %vm743_vm3, %v2881_v62 }
 0x221   :  { %v1242_v53 = vadd.f32 %v1232_v40, %v1191_v38  ;;  %v1243_v13 = vadd.f32 %v1233_v63, %v1192_v31 }
 0x222   :  { %v1263_v18 = vpop.permute.xlu1 %1262  ;;  %2040 = vmatmul.msk.f32.gmra.mxu3 %vm743_vm3, %v2881_v62  ;;  %2035 = vmatmul.msk.f32.gmra.mxu2 %vm743_vm3, %v2881_v62 }
 0x223   :  { %v1265_v37 = vsel %vm1264_vm13, %v2939_v36, %v1263_v18  ;;  %v1274_v30 = vsel %vm1264_vm13, %v1263_v18, %v2657_v29 }
 0x224   :  { %v1283_v10 = vsel %vm91_vm7, %v1265_v37, 0.0  ;;  %v1284_v9 = vsel %vm92_vm11, %v1274_v30, 0.0 }
 0x225   :  { %v1293_v36 = vadd.f32 %v1283_v10, %v1242_v53  ;;  %v1294_v39 = vadd.f32 %v1284_v9, %v1243_v13 }
 0x227   :  { %v1303_v26 = vmax.f32 %v1293_v36, 0.0  ;;  %v1304_v47 = vmax.f32 %v1294_v39, 0.0 }
 0x228   :  { %2026 = vmatmul.msk.f32.gmra.mxu0 %vm743_vm3, %v2927_v60  ;;  %2031 = vmatmul.msk.f32.gmra.mxu1 %vm743_vm3, %v2927_v60 }
 0x229   :  { %1596 = vmatpush.msra.mxu2 %v1303_v26  ;;  %1628 = vmatpush.msra.mxu3 %v1304_v47 }
 0x22a   :  { %2041 = vmatmul.msk.f32.gmra.mxu3 %vm743_vm3, %v2927_v60  ;;  %2036 = vmatmul.msk.f32.gmra.mxu2 %vm743_vm3, %v2927_v60 }
 0x230   :  { %2042 = vmatmul.msk.f32.vlgmr.msra.gmra.mxu0 %vm743_vm3, %v2758_v22  ;;  %2047 = vmatmul.msk.f32.vlgmr.msra.gmra.mxu1 %vm743_vm3, %v2758_v22 }
 0x232   :  { %2057 = vmatmul.msk.f32.vlgmr.msra.gmra.mxu3 %vm743_vm3, %v2758_v22  ;;  %2052 = vmatmul.msk.f32.vlgmr.msra.gmra.mxu2 %vm743_vm3, %v2758_v22 }
 0x238   :  { %2043 = vmatmul.msk.f32.gmra.mxu0 %vm743_vm3, %v2784_v56  ;;  %2048 = vmatmul.msk.f32.gmra.mxu1 %vm743_vm3, %v2784_v56 }
 0x23a   :  { %2058 = vmatmul.msk.f32.gmra.mxu3 %vm743_vm3, %v2784_v56  ;;  %2053 = vmatmul.msk.f32.gmra.mxu2 %vm743_vm3, %v2784_v56 }
 0x240   :  { %2044 = vmatmul.msk.f32.gmra.mxu0 %vm743_vm3, %v2813_v17  ;;  %2049 = vmatmul.msk.f32.gmra.mxu1 %vm743_vm3, %v2813_v17 }
 0x242   :  { %2059 = vmatmul.msk.f32.gmra.mxu3 %vm743_vm3, %v2813_v17  ;;  %2054 = vmatmul.msk.f32.gmra.mxu2 %vm743_vm3, %v2813_v17 }
 0x248   :  { %2045 = vmatmul.msk.f32.gmra.mxu0 %vm743_vm3, %v2881_v62  ;;  %2050 = vmatmul.msk.f32.gmra.mxu1 %vm743_vm3, %v2881_v62 }
 0x24a   :  { %2060 = vmatmul.msk.f32.gmra.mxu3 %vm743_vm3, %v2881_v62  ;;  %2055 = vmatmul.msk.f32.gmra.mxu2 %vm743_vm3, %v2881_v62 }
 0x250   :  { %2046 = vmatmul.msk.f32.gmra.mxu0 %vm743_vm3, %v2927_v60  ;;  %2051 = vmatmul.msk.f32.gmra.mxu1 %vm743_vm3, %v2927_v60 }
 0x252   :  { %2056 = vmatmul.msk.f32.gmra.mxu2 %vm743_vm3, %v2927_v60  ;;  %2061 = vmatmul.msk.f32.gmra.mxu3 %vm743_vm3, %v2927_v60  ;;  %vm3496_vm3 = vcmp.ge.s32.totalorder %v2679_v61, 2 }
 0x265   :  { %v1374_v29 = vpop.f32.mrf.mxu3  ;;  %v1342_v22 = vpop.f32.mrf.mxu2 }
 0x266   :  { %1647 = vrot.lane.b32.xlu2 %v1374_v29, %s2125_s4 }
 0x26d   :  { %v1377_v56 = vpop.f32.mrf.mxu3  ;;  %v1345_v17 = vpop.f32.mrf.mxu2 }
 0x275   :  { %v3149_v23 = vpop.f32.mrf.mxu3  ;;  %v3151_v62 = vpop.f32.mrf.mxu2 }
 0x27d   :  { %v1383_v46 = vpop.f32.mrf.mxu3  ;;  %v1351_v14 = vpop.f32.mrf.mxu2 }
 0x285   :  { %v1406_v15 = vpop.f32.mrf.mxu0  ;;  %v1438_v60 = vpop.f32.mrf.mxu1 }
 0x286   :  { %1649 = vrot.lane.b32.xlu0 %v1406_v15, %s2125_s4  ;;  %v1386_v58 = vpop.f32.mrf.mxu3  ;;  %v1354_v8 = vpop.f32.mrf.mxu2 }
 0x28d   :  { %v1409_v43 = vpop.f32.mrf.mxu0  ;;  %v1441_v51 = vpop.f32.mrf.mxu1 }
 0x28e   :  { %1699 = vrot.lane.b32.xlu1 %v1409_v43, %s2126_s11  ;;  %1697 = vrot.lane.b32.xlu0 %v1377_v56, %s2126_s11  ;;  %v1502_v2 = vpop.f32.mrf.mxu3  ;;  %v1470_v28 = vpop.f32.mrf.mxu2 }
 0x295   :  { %v3156_v32 = vpop.f32.mrf.mxu0  ;;  %v3161_v48 = vpop.f32.mrf.mxu1 }
 0x296   :  { %1651 = vrot.lane.b32.xlu1 %v1438_v60, %s2125_s4  ;;  %v1505_v54 = vpop.f32.mrf.mxu3  ;;  %v1473_v1 = vpop.f32.mrf.mxu2 }
 0x29d   :  { %v1415_v0 = vpop.f32.mrf.mxu0  ;;  %v1447_v7 = vpop.f32.mrf.mxu1 }
 0x29e   :  { %1759 = vrot.lane.b32.xlu2 %v1415_v0, %s2127_s12  ;;  %1757 = vrot.lane.b32.xlu1 %v1383_v46, %s2127_s12  ;;  %v3168_v25 = vpop.f32.mrf.mxu3  ;;  %v3170_v57 = vpop.f32.mrf.mxu2 }
 0x2a5   :  { %v1418_v20 = vpop.f32.mrf.mxu0  ;;  %v1450_v59 = vpop.f32.mrf.mxu1 }
 0x2a6   :  { %1701 = vrot.lane.b32.xlu2 %v1441_v51, %s2126_s11  ;;  %1809 = vrot.lane.b32.xlu0 %v1418_v20, %s2128_s13  ;;  %v1511_v34 = vpop.f32.mrf.mxu3  ;;  %v1479_v49 = vpop.f32.mrf.mxu2 }
 0x2ad   :  { %v1534_v12 = vpop.f32.mrf.mxu0  ;;  %v1566_v3 = vpop.f32.mrf.mxu1 }
 0x2ae   :  { %1657 = vrot.lane.b32.xlu1 %v1534_v12, %s2125_s4  ;;  %1807 = vrot.lane.b32.xlu2 %v1386_v58, %s2128_s13  ;;  %v1514_v27 = vpop.f32.mrf.mxu3  ;;  %v1482_v4 = vpop.f32.mrf.mxu2 }
 0x2af   :  { %1655 = vrot.lane.b32.xlu0 %v1502_v2, %s2125_s4 }
 0x2b5   :  { %v1537_v41 = vpop.f32.mrf.mxu0  ;;  %v1569_v50 = vpop.f32.mrf.mxu1 }
 0x2b6   :  { %1707 = vrot.lane.b32.xlu2 %v1537_v41, %s2126_s11  ;;  %1645 = vrot.lane.b32.xlu1 %v1342_v22, %s2125_s4  ;;  %v1630_v33 = vpop.f32.mrf.mxu3  ;;  %v1598_v38 = vpop.f32.mrf.mxu2 }
 0x2b7   :  { %1761 = vrot.lane.b32.xlu0 %v1447_v7, %s2127_s12 }
 0x2bd   :  { %v3175_v55 = vpop.f32.mrf.mxu0  ;;  %v3188_v40 = vpop.f32.mrf.mxu1 }
 0x2be   :  { %1705 = vrot.lane.b32.xlu1 %v1505_v54, %s2126_s11  ;;  %1695 = vrot.lane.b32.xlu2 %v1345_v17, %s2126_s11  ;;  %v1633_v31 = vpop.f32.mrf.mxu3  ;;  %v1601_v63 = vpop.f32.mrf.mxu2 }
 0x2c0   :  { %v1648_v10 = vpop.permute.xlu2 %1647 }
 0x2c5   :  { %v1543_v45 = vpop.f32.mrf.mxu0  ;;  %v1575_v13 = vpop.f32.mrf.mxu1 }
 0x2c6   :  { %1767 = vrot.lane.b32.xlu0 %v1543_v45, %s2127_s12  ;;  %1811 = vrot.lane.b32.xlu1 %v1450_v59, %s2128_s13  ;;  %v3193_v18 = vpop.f32.mrf.mxu3  ;;  %v3195_v53 = vpop.f32.mrf.mxu2 }
 0x2c7   :  { %1659 = vrot.lane.b32.xlu2 %v1566_v3, %s2125_s4 }
 0x2cd   :  { %v1546_v52 = vpop.f32.mrf.mxu0  ;;  %v1578_v9 = vpop.f32.mrf.mxu1 }
 0x2ce   :  { %1709 = vrot.lane.b32.xlu0 %v1569_v50, %s2126_s11  ;;  %1817 = vrot.lane.b32.xlu1 %v1546_v52, %s2128_s13  ;;  %v1639_v37 = vpop.f32.mrf.mxu3  ;;  %v1607_v30 = vpop.f32.mrf.mxu2 }
 0x2cf   :  { %1765 = vrot.lane.b32.xlu2 %v1511_v34, %s2127_s12 }
 0x2d6   :  { %1663 = vrot.lane.b32.xlu1 %v1630_v33, %s2125_s4  ;;  %1755 = vrot.lane.b32.xlu0 %v1351_v14, %s2127_s12  ;;  %v1610_v39 = vpop.f32.mrf.mxu2  ;;  %v1642_v26 = vpop.f32.mrf.mxu3 }
 0x2d7   :  { %1653 = vrot.lane.b32.xlu2 %v1470_v28, %s2125_s4 }
 0x2de   :  { %1815 = vrot.lane.b32.xlu0 %v1514_v27, %s2128_s13  ;;  %1805 = vrot.lane.b32.xlu1 %v1354_v8, %s2128_s13 }
 0x2df   :  { %1713 = vrot.lane.b32.xlu2 %v1633_v31, %s2126_s11 }
 0x2e6   :  { %1769 = vrot.lane.b32.xlu1 %v1575_v13, %s2127_s12  ;;  %1703 = vrot.lane.b32.xlu0 %v1473_v1, %s2126_s11 }
 0x2e7   :  { %1813 = vrot.lane.b32.xlu2 %v1482_v4, %s2128_s13 }
 0x2ee   :  { %1773 = vrot.lane.b32.xlu0 %v1639_v37, %s2127_s12  ;;  %1763 = vrot.lane.b32.xlu1 %v1479_v49, %s2127_s12 }
 0x2ef   :  { %1771 = vrot.lane.b32.xlu2 %v1607_v30, %s2127_s12 }
 0x2f6   :  { %1661 = vrot.lane.b32.xlu0 %v1598_v38, %s2125_s4  ;;  %1711 = vrot.lane.b32.xlu1 %v1601_v63, %s2126_s11  ;;  %s1880_s4 = sshll.u32 %s2129_s0, 4  ;;  %s1881_s4 = int_to_ptr.vmem [resolvable:$true] %s1880_s4 }
 0x2f7   :  { %1819 = vrot.lane.b32.xlu2 %v1578_v9, %s2128_s13 }
 0x2f8   :  { %v1760_v36 = vpop.permute.xlu2 %1759  ;;  %v1650_v22 = vpop.permute.xlu0 %1649 }
 0x2f9   :  { %v1672_v33 = vsel %vm1101_vm5, %v1648_v10, %v1650_v22 }
 0x2fe   :  { %1823 = vrot.lane.b32.xlu1 %v1642_v26, %s2128_s13  ;;  %1821 = vrot.lane.b32.xlu0 %v1610_v39, %s2128_s13  ;;  %s1882_s13 = sshll.u32 %s3458_s7, 4  ;;  %s1883_s13 = int_to_ptr.hbm [resolvable:$true] %s1882_s13 }
 0x300   :  { %v1700_v47 = vpop.permute.xlu1 %1699  ;;  %v3208_v29 = vpop.permute.xlu2 %1701 }
 0x301   :  { %v1721_v56 = vsel %vm1152_vm4, %v1700_v47, %v3208_v29  ;;  %v1698_v8 = vpop.permute.xlu0 %1697 }
 0x302   :  { %v1728_v14 = vsel %vm66_vm9, %v1721_v56, 0.0  ;;  %v1722_v4 = vsel %vm1152_vm4, %v1698_v8, %v1700_v47  ;;  %vm3497_vm9 = vcmp.lt.s32.totalorder %v2679_v61, 639 }
 0x308   :  { %v3213_v17 = vpop.permute.xlu1 %1651  ;;  %v3215_v15 = vpop.permute.xlu2 %1807 }
 0x309   :  { %v1671_v46 = vsel %vm1101_vm5, %v1650_v22, %v3213_v17 }
 0x30a   :  { %v1678_v43 = vsel %vm56_vm14, %v1671_v46, 0.0  ;;  %vm3499_vm14 = vcmp.lt.s32.totalorder %v2679_v61, 638 }
 0x30b   :  { %v3224_v60 = vadd.f32 %v1728_v14, %v1678_v43 }
 0x310   :  { %v3226_v58 = vpop.permute.xlu2 %1707  ;;  %v1758_v51 = vpop.permute.xlu1 %1757 }
 0x311   :  { %v1782_v3 = vsel %vm1213_vm10, %v1758_v51, %v1760_v36 }
 0x312   :  { %v1786_v52 = vsel %vm3497_vm9, %v1782_v3, 0.0  ;;  %vm3501_vm9 = vcmp.lt.s32.totalorder %v2800_v42, 639 }
 0x318   :  { %v1696_v2 = vpop.permute.xlu2 %1695  ;;  %v1810_v28 = vpop.permute.xlu0 %1809 }
 0x319   :  { %v1723_v12 = vsel %vm1152_vm4, %v1696_v2, %v1698_v8  ;;  %v1832_v45 = vsel %vm1264_vm13, %v3215_v15, %v1810_v28 }
 0x31a   :  { %v1726_v34 = vsel %vm64_vm6, %v1723_v12, 0.0  ;;  %vm3498_vm6 = vcmp.ge.s32.totalorder %v2800_v42, 1  ;;  %v1836_v63 = vsel %vm3499_vm14, %v1832_v45, 0.0  ;;  %vm3503_vm14 = vcmp.ge.s32.totalorder %v2959_v16, 2 }
 0x31b   :  { %v1727_v31 = vsel %vm3498_vm6, %v1722_v4, 0.0  ;;  %vm3502_vm6 = vcmp.lt.s32.totalorder %v2800_v42, 638 }
 0x320   :  { %v1658_v0 = vpop.permute.xlu1 %1657 }
 0x321   :  { %v3228_v20 = vpop.permute.xlu2 %1659  ;;  %v3233_v1 = vpop.permute.xlu0 %1655 }
 0x322   :  { %v1667_v54 = vsel %vm1101_vm5, %v1658_v0, %v3228_v20 }
 0x328   :  { %v1646_v7 = vpop.permute.xlu1 %1645 }
 0x329   :  { %v1673_v41 = vsel %vm1101_vm5, %v1646_v7, %v1648_v10  ;;  %v3239_v59 = vpop.permute.xlu2 %1765  ;;  %v3261_v13 = vpop.permute.xlu0 %1761 }
 0x32a   :  { %v1676_v49 = vsel %vm3496_vm3, %v1673_v41, 0.0  ;;  %vm3500_vm3 = vcmp.ge.s32.totalorder %v2800_v42, 2  ;;  %v1781_v10 = vsel %vm1213_vm10, %v1760_v36, %v3261_v13 }
 0x32b   :  { %v1736_v27 = vadd.f32 %v1726_v34, %v1676_v49  ;;  %v1787_v47 = vsel %vm3501_vm9, %v1781_v10, 0.0  ;;  %v1682_v49 = vsel %vm3503_vm14, %v1667_v54, 0.0  ;;  %vm3505_vm9 = vcmp.ge.s32.totalorder %v2695_v35, 1 }
 0x32c   :  { %vm3507_vm14 = vcmp.lt.s32.totalorder %v2695_v35, 639 }
 0x32d   :  { %v1746_v50 = vadd.f32 %v1736_v27, %v3149_v23  ;;  %v1677_v23 = vsel %vm3500_vm3, %v1672_v33, 0.0  ;;  %vm3504_vm3 = vcmp.ge.s32.totalorder %v2959_v16, 1 }
 0x32e   :  { %v1737_v39 = vadd.f32 %v1727_v31, %v1677_v23 }
 0x32f   :  { %v1796_v38 = vadd.f32 %v1786_v52, %v1746_v50 }
 0x330   :  { %v1706_v37 = vpop.permute.xlu1 %1705  ;;  %v1747_v61 = vadd.f32 %v1737_v39, %v3156_v32 }
 0x331   :  { %v1846_v30 = vadd.f32 %v1836_v63, %v1796_v38  ;;  %v1654_v9 = vpop.permute.xlu2 %1653  ;;  %v1718_v63 = vsel %vm1152_vm4, %v1706_v37, %v3226_v58 }
 0x332   :  { %v1797_v46 = vadd.f32 %v1787_v47, %v1747_v61 }
 0x333   :  { %v1856_v26 = vmax.f32 %v1846_v30, 0.0 }
 0x335   :  { %1866 = vst [vmem:[#allocation5 + $0x8] sm:$0xff] %v1856_v26 }
 0x338   :  { %v1768_v22 = vpop.permute.xlu0 %1767  ;;  %v3271_v56 = vpop.permute.xlu1 %1811 }
 0x339   :  { %v1831_v14 = vsel %vm1264_vm13, %v1810_v28, %v3271_v56  ;;  %v3276_v43 = vpop.permute.xlu2 %1713 }
 0x33a   :  { %v1837_v36 = vsel %vm3502_vm6, %v1831_v14, 0.0  ;;  %v1724_v27 = vsel %vm1152_vm4, %v3276_v43, %v1696_v2  ;;  %vm3506_vm6 = vcmp.ge.s32.totalorder %v2695_v35, 2  ;;  %v1669_v14 = vsel %vm1101_vm5, %v1654_v9, %v3233_v1 }
 0x33b   :  { %v1847_v8 = vadd.f32 %v1837_v36, %v1797_v46  ;;  %v1725_v54 = vsel %vm3505_vm9, %v1724_v27, 0.0  ;;  %vm3509_vm9 = vcmp.lt.s32.totalorder %v2695_v35, 638 }
 0x33d   :  { %v1857_v12 = vmax.f32 %v1847_v8, 0.0 }
 0x33f   :  { %1867 = vst [vmem:[#allocation5 + $0x10] sm:$0xff] %v1857_v12 }
 0x340   :  { %v3280_v41 = vpop.permute.xlu0 %1709  ;;  %v1818_v34 = vpop.permute.xlu1 %1817 }
 0x341   :  { %v1717_v32 = vsel %vm1152_vm4, %v3226_v58, %v3280_v41  ;;  %v1814_v3 = vpop.permute.xlu2 %1813 }
 0x342   :  { %v1732_v28 = vsel %vm3504_vm3, %v1717_v32, 0.0  ;;  %vm3508_vm3 = vcmp.ge.s32.totalorder %v2954_v21, 1 }
 0x343   :  { %v3290_v42 = vadd.f32 %v1732_v28, %v1682_v49 }
 0x348   :  { %v3295_v4 = vpop.permute.xlu1 %1663  ;;  %v3297_v45 = vpop.permute.xlu0 %1755 }
 0x349   :  { %v1674_v50 = vsel %vm1101_vm5, %v3295_v4, %v1646_v7  ;;  %v3306_v38 = vpop.permute.xlu2 %1771  ;;  %v1783_v2 = vsel %vm1213_vm10, %v3297_v45, %v1758_v51  ;;  %v1668_v7 = vsel %vm1101_vm5, %v3233_v1, %v1658_v0 }
 0x34a   :  { %v1675_v52 = vsel %vm3506_vm6, %v1674_v50, 0.0  ;;  %v1785_v30 = vsel %vm3507_vm14, %v1783_v2, 0.0  ;;  %vm3510_vm6 = vcmp.ge.s32.totalorder %v2954_v21, 2  ;;  %vm3511_vm14 = vcmp.ge.s32.totalorder %v2829_v24, 2 }
 0x34b   :  { %v1735_v33 = vadd.f32 %v1725_v54, %v1675_v52  ;;  %v1681_v0 = vsel %vm3510_vm6, %v1668_v7, 0.0  ;;  %vm3514_vm6 = vcmp.ge.s32.totalorder %v2767_v19, 2 }
 0x34d   :  { %v1745_v31 = vadd.f32 %v1735_v33, %v3151_v62  ;;  %v1731_v62 = vsel %vm3508_vm3, %v1718_v63, 0.0  ;;  %vm3512_vm3 = vcmp.ge.s32.totalorder %v2767_v19, 1 }
 0x34e   :  { %v1741_v47 = vadd.f32 %v1731_v62, %v1681_v0 }
 0x34f   :  { %v1795_v10 = vadd.f32 %v1785_v30, %v1745_v31 }
 0x350   :  { %v1816_v23 = vpop.permute.xlu0 %1815  ;;  %v3320_v39 = vpop.permute.xlu1 %1805  ;;  %v1751_v35 = vadd.f32 %v1741_v47, %v3175_v55 }
 0x351   :  { %v1833_v51 = vsel %vm1264_vm13, %v3320_v39, %v3215_v15  ;;  %v3332_v46 = vpop.permute.xlu2 %1819  ;;  %v1670_v15 = vsel %vm1101_vm5, %v3213_v17, %v1654_v9  ;;  %v1680_v17 = vsel %vm3511_vm14, %v1669_v14, 0.0  ;;  %v1828_v52 = vsel %vm1264_vm13, %v1816_v23, %v1818_v34 }
 0x352   :  { %v1835_v58 = vsel %vm3509_vm9, %v1833_v51, 0.0  ;;  %v1827_v1 = vsel %vm1264_vm13, %v1818_v34, %v3332_v46  ;;  %vm3513_vm9 = vcmp.ge.s32.totalorder %v2829_v24, 1  ;;  %v1679_v50 = vsel %vm3514_vm6, %v1670_v15, 0.0 }
 0x353   :  { %v1845_v26 = vadd.f32 %v1835_v58, %v1795_v10  ;;  %v1841_v54 = vsel %vm89_vm15, %v1827_v1, 0.0  ;;  %vm3516_vm14 = vcmp.lt.s32.totalorder %v2829_v24, 638  ;;  %v1829_v21 = vsel %vm1264_vm13, %v1814_v3, %v1816_v23 }
 0x354   :  { %v1840_v30 = vsel %vm3516_vm14, %v1828_v52, 0.0  ;;  %v1830_v58 = vsel %vm1264_vm13, %v3271_v56, %v1814_v3  ;;  %vm3517_vm15 = vcmp.lt.s32.totalorder %v2767_v19, 639  ;;  %vm3520_vm6 = vcmp.lt.s32.totalorder %v2818_v11, 638 }
 0x355   :  { %v1855_v61 = vmax.f32 %v1845_v26, 0.0  ;;  %v1838_v56 = vsel %vm3520_vm6, %v1830_v58, 0.0 }
 0x357   :  { %1865 = vst [vmem:[#allocation5] sm:$0xff] %v1855_v61 }
 0x358   :  { %v1770_v36 = vpop.permute.xlu1 %1769  ;;  %v1704_v8 = vpop.permute.xlu0 %1703 }
 0x359   :  { %v1777_v12 = vsel %vm1213_vm10, %v1768_v22, %v1770_v36  ;;  %v1719_v32 = vsel %vm1152_vm4, %v1704_v8, %v1706_v37  ;;  %v1720_v49 = vsel %vm1152_vm4, %v3208_v29, %v1704_v8  ;;  %v1778_v29 = vsel %vm1213_vm10, %v3239_v59, %v1768_v22 }
 0x35a   :  { %v1791_v55 = vsel %vm79_vm0, %v1777_v12, 0.0  ;;  %v1729_v9 = vsel %vm3512_vm3, %v1720_v49, 0.0  ;;  %v1730_v37 = vsel %vm3513_vm9, %v1719_v32, 0.0  ;;  %vm3515_vm0 = vcmp.lt.s32.totalorder %v2829_v24, 639 }
 0x35b   :  { %v1801_v28 = vadd.f32 %v1791_v55, %v1751_v35  ;;  %v1740_v27 = vadd.f32 %v1730_v37, %v1680_v17  ;;  %v1739_v33 = vadd.f32 %v1729_v9, %v1679_v50  ;;  %v1790_v63 = vsel %vm3515_vm0, %v1778_v29, 0.0 }
 0x35c   :  { %v1748_v24 = vadd.f32 %v3224_v60, %v3161_v48  ;;  %vm3518_vm3 = vcmp.lt.s32.totalorder %v2818_v11, 639  ;;  %vm3519_vm9 = vcmp.lt.s32.totalorder %v2767_v19, 638  ;;  %vm3521_vm0 = vcmp.ge.s32.totalorder %v2980_v44, 1 }
 0x35d   :  { %v1750_v31 = vadd.f32 %v1740_v27, %v3168_v25  ;;  %v1851_v2 = vadd.f32 %v1841_v54, %v1801_v28  ;;  %v1749_v34 = vadd.f32 %v1739_v33, %v3170_v57  ;;  %v1752_v37 = vadd.f32 %v3290_v42, %v3188_v40 }
 0x35f   :  { %v1800_v7 = vadd.f32 %v1790_v63, %v1750_v31  ;;  %v1861_v22 = vmax.f32 %v1851_v2, 0.0 }
 0x360   :  { %v1774_v62 = vpop.permute.xlu0 %1773  ;;  %v1764_v10 = vpop.permute.xlu1 %1763 }
 0x361   :  { %v1850_v51 = vadd.f32 %v1840_v30, %v1800_v7  ;;  %1871 = vst [vmem:[#allocation5 + $0x30] sm:$0xff] %v1861_v22  ;;  %v1779_v25 = vsel %vm1213_vm10, %v1764_v10, %v3239_v59  ;;  %v1780_v0 = vsel %vm1213_vm10, %v3261_v13, %v1764_v10  ;;  %v1839_v59 = vsel %vm3519_vm9, %v1829_v21, 0.0 }
 0x362   :  { %v1789_v23 = vsel %vm3517_vm15, %v1779_v25, 0.0  ;;  %v1788_v57 = vsel %vm3518_vm3, %v1780_v0, 0.0  ;;  %v1776_v13 = vsel %vm1213_vm10, %v1770_v36, %v3306_v38  ;;  %v1775_v17 = vsel %vm1213_vm10, %v3306_v38, %v1774_v62 }
 0x363   :  { %v1860_v26 = vmax.f32 %v1850_v51, 0.0  ;;  %v1799_v47 = vadd.f32 %v1789_v23, %v1749_v34  ;;  %v1798_v61 = vadd.f32 %v1788_v57, %v1748_v24 }
 0x365   :  { %1870 = vst [vmem:[#allocation5 + $0x28] sm:$0xff] %v1860_v26  ;;  %v1849_v48 = vadd.f32 %v1839_v59, %v1799_v47  ;;  %v1848_v60 = vadd.f32 %v1838_v56, %v1798_v61 }
 0x367   :  { %v1859_v3 = vmax.f32 %v1849_v48, 0.0  ;;  %v1858_v14 = vmax.f32 %v1848_v60, 0.0 }
 0x368   :  { %v1662_v15 = vpop.permute.xlu0 %1661  ;;  %v1712_v35 = vpop.permute.xlu1 %1711 }
 0x369   :  { %1869 = vst [vmem:[#allocation5 + $0x20] sm:$0xff] %v1859_v3  ;;  %v1665_v19 = vsel %vm1101_vm5, %v1662_v15, %v3295_v4  ;;  %v1666_v11 = vsel %vm1101_vm5, %v3228_v20, %v1662_v15  ;;  %v1715_v8 = vsel %vm1152_vm4, %v1712_v35, %v3276_v43  ;;  %v1716_v36 = vsel %vm1152_vm4, %v3280_v41, %v1712_v35 }
 0x36a   :  { %1868 = vst [vmem:[#allocation5 + $0x18] sm:$0xff] %v1858_v14  ;;  %v1683_v12 = vsel %vm61_vm2, %v1666_v11, 0.0  ;;  %v1684_v32 = vsel %vm62_vm12, %v1665_v19, 0.0  ;;  %v1733_v4 = vsel %vm3521_vm0, %v1716_v36, 0.0  ;;  %vm3522_vm5 = vcmp.ge.s32.totalorder %v3006_v6, 1 }
 0x36b   :  { %v1734_v20 = vsel %vm3522_vm5, %v1715_v8, 0.0  ;;  %v1743_v49 = vadd.f32 %v1733_v4, %v1683_v12  ;;  %v1784_v43 = vsel %vm1213_vm10, %v1774_v62, %v3297_v45  ;;  %vm3523_vm4 = vcmp.lt.s32.totalorder %v2959_v16, 639 }
 0x36c   :  { %v1744_v1 = vadd.f32 %v1734_v20, %v1684_v32  ;;  %v1792_v41 = vsel %vm3523_vm4, %v1776_v13, 0.0  ;;  %v1794_v29 = vsel %vm82_vm1, %v1784_v43, 0.0  ;;  %v1793_v45 = vsel %vm81_vm8, %v1775_v17, 0.0 }
 0x36d   :  { %v1753_v55 = vadd.f32 %v1743_v49, %v3195_v53  ;;  %v1802_v28 = vadd.f32 %v1792_v41, %v1752_v37  ;;  %vm3524_vm8 = vcmp.lt.s32.totalorder %v2959_v16, 638 }
 0x36e   :  { %v1754_v9 = vadd.f32 %v1744_v1, %v3193_v18 }
 0x36f   :  { %v1803_v53 = vadd.f32 %v1793_v45, %v1753_v55 }
 0x370   :  { %v1804_v27 = vadd.f32 %v1794_v29, %v1754_v9  ;;  %v1824_v50 = vpop.permute.xlu1 %1823  ;;  %v1822_v54 = vpop.permute.xlu0 %1821 }
 0x371   :  { %v1834_v38 = vsel %vm1264_vm13, %v1824_v50, %v3320_v39  ;;  %v1825_v18 = vsel %vm1264_vm13, %v1822_v54, %v1824_v50  ;;  %v1826_v40 = vsel %vm1264_vm13, %v3332_v46, %v1822_v54 }
 0x372   :  { %v1844_v42 = vsel %vm92_vm11, %v1834_v38, 0.0  ;;  %v1842_v52 = vsel %vm3524_vm8, %v1826_v40, 0.0  ;;  %v1843_v33 = vsel %vm91_vm7, %v1825_v18, 0.0 }
 0x373   :  { %v1854_v31 = vadd.f32 %v1844_v42, %v1804_v27  ;;  %v1852_v2 = vadd.f32 %v1842_v52, %v1802_v28  ;;  %v1853_v39 = vadd.f32 %v1843_v33, %v1803_v53 }
 0x375   :  { %v1864_v5 = vmax.f32 %v1854_v31, 0.0  ;;  %v1862_v46 = vmax.f32 %v1852_v2, 0.0  ;;  %v1863_v63 = vmax.f32 %v1853_v39, 0.0 }
 0x377   :  { %1874 = vst [vmem:[#allocation5 + $0x48] sm:$0xff] %v1864_v5 }
 0x378   :  { %1872 = vst [vmem:[#allocation5 + $0x38] sm:$0xff] %v1862_v46 }
 0x379   :  { %1873 = vst [vmem:[#allocation5 + $0x40] sm:$0xff] %v1863_v63 }
 0x37a   :  { %1885 = dma.vmem_to_hbm [thread:$0]  %s1881_s4, 1280, %s1883_s13, [#allocation4]  }
 0x37b   :  { %2120 = dma.done.wait [#allocation4], 1280  }
 0x37c   :  { %2121 = vsyncadd [#allocation4], 4294966016 }
 0x37d   :  { %1890 = vsyncpa [#allocation3], 1 }
 0x37e   :  { %1891 = vsyncpa [#allocation4], 1 }

</bundles_post_ra>
